<compile_context>
chip_gen: v7x
topology: tpu7x:2x2x1
jax: 0.10.0
libtpu: 0.0.40
codegen_flags: <defaults>
</compile_context>

<pallas_src>
import functools

import numpy as np
import jax
import jax.numpy as jnp
from jax.experimental import pallas as pl
from jax.experimental.pallas import tpu as pltpu


# ----------------------------------------------------------------------------
# Fixed lucid-colorspace constants (not learned).
# ----------------------------------------------------------------------------
_COLOR_CORRELATION_SVD_SQRT = np.asarray(
    [[0.26, 0.09, 0.02],
     [0.27, 0.00, -0.05],
     [0.27, -0.09, 0.03]], dtype=np.float32)
_MAX_NORM = np.max(np.linalg.norm(_COLOR_CORRELATION_SVD_SQRT, axis=0))
COLOR_NORM = (_COLOR_CORRELATION_SVD_SQRT / _MAX_NORM).astype(np.float32)  # (3,3)


# ----------------------------------------------------------------------------
# Deterministic matrices (numpy glue; mirror get_fft_scale and ortho irfft2).
# ----------------------------------------------------------------------------
def get_fft_scale(image_size, decay_power=0.75):
    d = 0.5 ** 0.5
    fy = np.fft.fftfreq(image_size, d=d)[:, None]
    fx = np.fft.rfftfreq(image_size, d=d)[: image_size // 2]
    freqs = (fx * fx + fy * fy) ** decay_power
    scale = 1.0 / np.maximum(freqs, 1.0 / (image_size * d))
    return scale.astype(np.float32)                              # (H, Hf)


def idft_matrices(H):
    # ortho inverse DFT along the height axis: Y = (Ar + i*Ai) @ X
    m = np.arange(H)[:, None].astype(np.float64)
    h = np.arange(H)[None, :].astype(np.float64)
    ang = 2.0 * np.pi * m * h / H
    Ar = (np.cos(ang) / np.sqrt(H)).astype(np.float32)           # (H, H)
    Ai = (np.sin(ang) / np.sqrt(H)).astype(np.float32)           # (H, H)
    return Ar, Ai


def irfft_matrices(H, Hf):
    # ortho irfft along the last axis, output length H from Hf complex freqs
    # (the Nyquist column is zero-padded by irfft2(s=(H,H)), so it drops out).
    k = np.arange(Hf)[:, None].astype(np.float64)
    n = np.arange(H)[None, :].astype(np.float64)
    w = np.where(k == 0, 1.0, 2.0)
    ang = 2.0 * np.pi * k * n / H
    CrT = (w * np.cos(ang) / np.sqrt(H)).astype(np.float32)      # (Hf, H)
    CiT = (-w * np.sin(ang) / np.sqrt(H)).astype(np.float32)     # (Hf, H)
    return CrT, CiT


@functools.lru_cache(maxsize=8)
def _dft_constants(H, decay_power):
    """Per-(H, decay_power) device constants, uploaded once.

    NOTE: cached device arrays assume single-device / default placement.
    """
    Hf = H // 2
    scale = get_fft_scale(H, decay_power)                        # (H, Hf)
    scale_il = np.repeat(scale, 2, axis=1)                       # (H, H) interleaved r/i
    Ar, Ai = idft_matrices(H)
    CrT, CiT = irfft_matrices(H, Hf)
    # Interleaved-row irfft matrices (consume the native r0,i0,r1,i1,... layout):
    #   U = X_il @ D1 = Xr@CrT + Xi@CiT ;  W = X_il @ D2 = Xi@CrT - Xr@CiT
    #   img = Ar @ U - Ai @ W
    D1 = np.empty((H, H), np.float32)
    D1[0::2, :] = CrT
    D1[1::2, :] = CiT
    D2 = np.empty((H, H), np.float32)
    D2[0::2, :] = -CiT
    D2[1::2, :] = CrT
    return (jnp.asarray(scale_il),
            jnp.asarray(D1, dtype=jnp.bfloat16),
            jnp.asarray(D2, dtype=jnp.bfloat16),
            jnp.asarray(Ar, dtype=jnp.bfloat16),
            jnp.asarray(Ai, dtype=jnp.bfloat16))


# ----------------------------------------------------------------------------
# Pallas kernel: one (batch, output-channel) pair per grid step.
# ----------------------------------------------------------------------------
def _make_kernel(color_norm):
    c = [[float(color_norm[i, j]) for j in range(3)] for i in range(3)]

    def kernel(spec_ref, scale_ref, d1_ref, d2_ref, ar_ref, ai_ref, o_ref):
        d = pl.program_id(1)                       # output RGB channel index

        # color-mix coefficients for this output channel (scalar selects)
        def coef(j):
            return jnp.where(d == 0, c[0][j], jnp.where(d == 1, c[1][j], c[2][j]))

        # lucid->RGB mix (linear -> applied in the frequency domain) fused with
        # the fft_scale multiply; input stays in its native interleaved layout.
        x = (coef(0) * spec_ref[0, 0]
             + coef(1) * spec_ref[0, 1]
             + coef(2) * spec_ref[0, 2]) * scale_ref[...]         # (H, H) f32
        xb = x.astype(jnp.bfloat16)

        # W-axis irfft (contraction over the interleaved frequency axis).
        u = jnp.dot(xb, d1_ref[...], preferred_element_type=jnp.float32)  # (H, H)
        w = jnp.dot(xb, d2_ref[...], preferred_element_type=jnp.float32)  # (H, H)

        # H-axis ortho ifft (real part): img = Ar @ U - Ai @ W.
        z = (jnp.dot(ar_ref[...], u.astype(jnp.bfloat16),
                     preferred_element_type=jnp.float32)
             - jnp.dot(ai_ref[...], w.astype(jnp.bfloat16),
                       preferred_element_type=jnp.float32))               # (H, H)

        # sigmoid: exp + approx reciprocal both run on the EUP slot.
        img = pl.reciprocal(1.0 + jnp.exp(-z), approx=True)
        o_ref[0, 0] = img.astype(o_ref.dtype)

    return kernel


# ----------------------------------------------------------------------------
# VMEM budgeting.
# ----------------------------------------------------------------------------
def _vmem_cap_bytes():
    try:
        phys = int(pltpu.get_tpu_info().vmem_capacity_bytes)
    except Exception:
        phys = 64 * 1024 * 1024          # conservative (v7x-sized) fallback
    return max(32 * 1024 * 1024, (phys * 3) // 4)


def _vmem_limit_bytes(H, out_itemsize, const_buffers):
    h2 = H * H
    need = (2 * 3 * h2 * 4                       # input block (1,3,H,H) f32, 2-deep
            + 2 * h2 * out_itemsize              # output block (1,1,H,H), 2-deep
            + const_buffers * (h2 * 4 + 4 * h2 * 2)  # scale f32 + 4 bf16 DFT mats
            + 32 * h2)                           # live in-kernel f32/bf16 temps
    need = int(need * 1.25) + (1 << 20)          # headroom + fixed overhead
    return int(min(_vmem_cap_bytes(), max(32 * 1024 * 1024, need)))


# ----------------------------------------------------------------------------
# pallas_call builder + public forward.
# ----------------------------------------------------------------------------
def _build_forward(B, H, out_dtype, single_buffer_consts, vmem_limit):
    kernel = _make_kernel(COLOR_NORM)

    def const_spec():
        if single_buffer_consts:
            return pl.BlockSpec((H, H), lambda b, d: (0, 0),
                                pipeline_mode=pl.Buffered(1))
        return pl.BlockSpec((H, H), lambda b, d: (0, 0))

    return pl.pallas_call(
        kernel,
        out_shape=jax.ShapeDtypeStruct((B, 3, H, H), out_dtype),
        grid_spec=pltpu.PrefetchScalarGridSpec(
            num_scalar_prefetch=0,
            grid=(B, 3),
            in_specs=[
                # whole 3-channel spectrum for batch b; block index ignores d so
                # the pipeliner DMAs it once per batch element.
                pl.BlockSpec((1, 3, H, H), lambda b, d: (b, 0, 0, 0)),
                const_spec(),   # interleaved fft scale (f32)
                const_spec(),   # D1 (bf16)
                const_spec(),   # D2 (bf16)
                const_spec(),   # Ar (bf16)
                const_spec(),   # Ai (bf16)
            ],
            out_specs=pl.BlockSpec((1, 1, H, H), lambda b, d: (b, d, 0, 0)),
        ),
        compiler_params=pltpu.CompilerParams(
            dimension_semantics=("parallel", "parallel"),
            vmem_limit_bytes=vmem_limit),
    )


def image_params_forward(spectrum_t, decay_power=0.75, out_dtype=jnp.float32):
    """Pallas implementation of ImageParams.postprocess (deterministic path).

    out_dtype=jnp.bfloat16 halves output HBM writeback if f32 is not required.
    """
    B, C, H, W = spectrum_t.shape
    assert C == 3 and H == W and H % 2 == 0
    scale_il, D1, D2, Ar, Ai = _dft_constants(H, float(decay_power))
    args = (spectrum_t, scale_il, D1, D2, Ar, Ai)
    out_itemsize = np.dtype(out_dtype).itemsize

    # Prefer single-buffered constants (saves one full copy of all constants in
    # VMEM); fall back to default double-buffering if pl.Buffered(1) is not
    # supported by this jax/Mosaic build.
    for single in (True, False):
        vmem_limit = _vmem_limit_bytes(H, out_itemsize, 1 if single else 2)
        try:
            return _build_forward(B, H, out_dtype, single, vmem_limit)(*args)
        except Exception:
            if not single:
                raise
    raise AssertionError("unreachable")


# ----------------------------------------------------------------------------
# Pure numpy reference (mirrors the PyTorch forward, training=False path).
# ----------------------------------------------------------------------------
def reference_forward(spectrum_np, decay_power=0.75):
    B, _, H, _ = spectrum_np.shape
    Hf = H // 2
    sp = spectrum_np.reshape(B, 3, H, Hf, 2)
    t = sp[..., 0] + 1j * sp[..., 1]
    t = get_fft_scale(H, decay_power) * t
    img = np.fft.irfft2(t, s=(H, H), norm='ortho')
    img = np.einsum('dc,bchw->bdhw', COLOR_NORM, img)
    return 1.0 / (1.0 + np.exp(-img))


if __name__ == "__main__":
    batch_size = 2
    image_size = 16
    std = 0.001

    # deterministic "init_image=None" parameter init: N(0, std) spectrum buffer
    key = jax.random.PRNGKey(0)
    spectrum_t = (std * jax.random.normal(
        key, (batch_size, 3, image_size, image_size))).astype(jnp.float32)

    out = image_params_forward(spectrum_t, decay_power=0.75)
    out = jax.block_until_ready(out)

    ref = reference_forward(np.asarray(spectrum_t), decay_power=0.75)
    assert out.shape == (batch_size, 3, image_size, image_size)
    out_np = np.asarray(out)
    assert np.all(np.isfinite(out_np))
    max_diff = np.max(np.abs(out_np - ref))
    assert np.allclose(out_np, ref, atol=5e-3), f"max abs diff {max_diff}"

    print("KERNEL_OK")
</pallas_src>

<mosaic_0001>
module attributes {stable_mosaic.version = 11 : i64} {
  func.func @kernel(%arg0: i32, %arg1: i32, %arg2: memref<1x3x16x16xf32, #tpu.memory_space<vmem>>, %arg3: memref<16x16xf32, #tpu.memory_space<vmem>>, %arg4: memref<16x16xbf16, #tpu.memory_space<vmem>>, %arg5: memref<16x16xbf16, #tpu.memory_space<vmem>>, %arg6: memref<16x16xbf16, #tpu.memory_space<vmem>>, %arg7: memref<16x16xbf16, #tpu.memory_space<vmem>>, %arg8: memref<1x1x16x16xf32, #tpu.memory_space<vmem>>) attributes {dimension_semantics = [#tpu.dimension_semantics<parallel>, #tpu.dimension_semantics<parallel>], iteration_bounds = array<i64: 2, 3>, scalar_prefetch = 0 : i64, scratch_operands = 0 : i64, tpu.core_type = #tpu.core_type<tc>, window_params = [{transform_indices = @transform_0, window_bounds = array<i64: 1, 3, 16, 16>}, {pipeline_mode = #tpu.pipeline_mode<synchronous>, transform_indices = @transform_1, window_bounds = array<i64: 16, 16>}, {pipeline_mode = #tpu.pipeline_mode<synchronous>, transform_indices = @transform_2, window_bounds = array<i64: 16, 16>}, {pipeline_mode = #tpu.pipeline_mode<synchronous>, transform_indices = @transform_3, window_bounds = array<i64: 16, 16>}, {pipeline_mode = #tpu.pipeline_mode<synchronous>, transform_indices = @transform_4, window_bounds = array<i64: 16, 16>}, {pipeline_mode = #tpu.pipeline_mode<synchronous>, transform_indices = @transform_5, window_bounds = array<i64: 16, 16>}, {transform_indices = @transform_6, window_bounds = array<i64: 1, 1, 16, 16>}]} {
    %c0_i32 = arith.constant 0 : i32
    %0 = arith.cmpi eq, %arg1, %c0_i32 : i32
    %c1_i32 = arith.constant 1 : i32
    %1 = arith.cmpi eq, %arg1, %c1_i32 : i32
    %cst = arith.constant 0.584475815 : f32
    %cst_0 = arith.constant 0.584475815 : f32
    %2 = arith.select %1, %cst, %cst_0 : f32
    %cst_1 = arith.constant 0.562828541 : f32
    %3 = arith.select %0, %cst_1, %2 : f32
    %c0 = arith.constant 0 : index
    %c0_2 = arith.constant 0 : index
    %c0_3 = arith.constant 0 : index
    %c0_4 = arith.constant 0 : index
    %4 = vector.load %arg2[%c0, %c0_2, %c0_3, %c0_4] : memref<1x3x16x16xf32, #tpu.memory_space<vmem>>, vector<1x1x16x16xf32>
    %5 = vector.shape_cast %4 : vector<1x1x16x16xf32> to vector<16x16xf32>
    %6 = vector.broadcast %3 : f32 to vector<16x16xf32>
    %7 = arith.mulf %6, %5 : vector<16x16xf32>
    %c0_i32_5 = arith.constant 0 : i32
    %8 = arith.cmpi eq, %arg1, %c0_i32_5 : i32
    %c1_i32_6 = arith.constant 1 : i32
    %9 = arith.cmpi eq, %arg1, %c1_i32_6 : i32
    %cst_7 = arith.constant 0.000000e+00 : f32
    %cst_8 = arith.constant -0.194825277 : f32
    %10 = arith.select %9, %cst_7, %cst_8 : f32
    %cst_9 = arith.constant 0.194825277 : f32
    %11 = arith.select %8, %cst_9, %10 : f32
    %c0_10 = arith.constant 0 : index
    %c1 = arith.constant 1 : index
    %c0_11 = arith.constant 0 : index
    %c0_12 = arith.constant 0 : index
    %12 = vector.load %arg2[%c0_10, %c1, %c0_11, %c0_12] : memref<1x3x16x16xf32, #tpu.memory_space<vmem>>, vector<1x1x16x16xf32>
    %13 = vector.shape_cast %12 : vector<1x1x16x16xf32> to vector<16x16xf32>
    %14 = vector.broadcast %11 : f32 to vector<16x16xf32>
    %15 = arith.mulf %14, %13 : vector<16x16xf32>
    %16 = arith.addf %7, %15 : vector<16x16xf32>
    %c0_i32_13 = arith.constant 0 : i32
    %17 = arith.cmpi eq, %arg1, %c0_i32_13 : i32
    %c1_i32_14 = arith.constant 1 : i32
    %18 = arith.cmpi eq, %arg1, %c1_i32_14 : i32
    %cst_15 = arith.constant -0.108236261 : f32
    %cst_16 = arith.constant 0.0649417564 : f32
    %19 = arith.select %18, %cst_15, %cst_16 : f32
    %cst_17 = arith.constant 0.0432945043 : f32
    %20 = arith.select %17, %cst_17, %19 : f32
    %c0_18 = arith.constant 0 : index
    %c2 = arith.constant 2 : index
    %c0_19 = arith.constant 0 : index
    %c0_20 = arith.constant 0 : index
    %21 = vector.load %arg2[%c0_18, %c2, %c0_19, %c0_20] : memref<1x3x16x16xf32, #tpu.memory_space<vmem>>, vector<1x1x16x16xf32>
    %22 = vector.shape_cast %21 : vector<1x1x16x16xf32> to vector<16x16xf32>
    %23 = vector.broadcast %20 : f32 to vector<16x16xf32>
    %24 = arith.mulf %23, %22 : vector<16x16xf32>
    %25 = arith.addf %16, %24 : vector<16x16xf32>
    %c0_21 = arith.constant 0 : index
    %c0_22 = arith.constant 0 : index
    %26 = vector.load %arg3[%c0_21, %c0_22] : memref<16x16xf32, #tpu.memory_space<vmem>>, vector<16x16xf32>
    %27 = arith.mulf %25, %26 : vector<16x16xf32>
    %28 = arith.truncf %27 : vector<16x16xf32> to vector<16x16xbf16>
    %c0_23 = arith.constant 0 : index
    %c0_24 = arith.constant 0 : index
    %29 = vector.load %arg4[%c0_23, %c0_24] : memref<16x16xbf16, #tpu.memory_space<vmem>>, vector<16x16xbf16>
    %cst_25 = arith.constant dense<0.000000e+00> : vector<16x16xf32>
    %30 = tpu.matmul %28, %29, %cst_25 {dimension_numbers = #tpu.dot_dimension_numbers<[1], [0], [0], [1], [0, 0, 1, 1], [], []>} : vector<16x16xbf16>, vector<16x16xbf16>, vector<16x16xf32> -> vector<16x16xf32>
    %c0_26 = arith.constant 0 : index
    %c0_27 = arith.constant 0 : index
    %31 = vector.load %arg5[%c0_26, %c0_27] : memref<16x16xbf16, #tpu.memory_space<vmem>>, vector<16x16xbf16>
    %cst_28 = arith.constant dense<0.000000e+00> : vector<16x16xf32>
    %32 = tpu.matmul %28, %31, %cst_28 {dimension_numbers = #tpu.dot_dimension_numbers<[1], [0], [0], [1], [0, 0, 1, 1], [], []>} : vector<16x16xbf16>, vector<16x16xbf16>, vector<16x16xf32> -> vector<16x16xf32>
    %c0_29 = arith.constant 0 : index
    %c0_30 = arith.constant 0 : index
    %33 = vector.load %arg6[%c0_29, %c0_30] : memref<16x16xbf16, #tpu.memory_space<vmem>>, vector<16x16xbf16>
    %34 = arith.truncf %30 : vector<16x16xf32> to vector<16x16xbf16>
    %cst_31 = arith.constant dense<0.000000e+00> : vector<16x16xf32>
    %35 = tpu.matmul %33, %34, %cst_31 {dimension_numbers = #tpu.dot_dimension_numbers<[1], [0], [0], [1], [0, 0, 1, 1], [], []>} : vector<16x16xbf16>, vector<16x16xbf16>, vector<16x16xf32> -> vector<16x16xf32>
    %c0_32 = arith.constant 0 : index
    %c0_33 = arith.constant 0 : index
    %36 = vector.load %arg7[%c0_32, %c0_33] : memref<16x16xbf16, #tpu.memory_space<vmem>>, vector<16x16xbf16>
    %37 = arith.truncf %32 : vector<16x16xf32> to vector<16x16xbf16>
    %cst_34 = arith.constant dense<0.000000e+00> : vector<16x16xf32>
    %38 = tpu.matmul %36, %37, %cst_34 {dimension_numbers = #tpu.dot_dimension_numbers<[1], [0], [0], [1], [0, 0, 1, 1], [], []>} : vector<16x16xbf16>, vector<16x16xbf16>, vector<16x16xf32> -> vector<16x16xf32>
    %39 = arith.subf %35, %38 : vector<16x16xf32>
    %cst_35 = arith.constant 0.000000e+00 : f32
    %40 = vector.broadcast %cst_35 : f32 to vector<16x16xf32>
    %41 = arith.subf %40, %39 : vector<16x16xf32>
    %42 = math.exp %41 : vector<16x16xf32>
    %cst_36 = arith.constant 1.000000e+00 : f32
    %43 = vector.broadcast %cst_36 : f32 to vector<16x16xf32>
    %44 = arith.addf %43, %42 : vector<16x16xf32>
    %45 = tpu.reciprocal %44 {approx = true} : vector<16x16xf32> -> vector<16x16xf32>
    %c0_37 = arith.constant 0 : index
    %c0_38 = arith.constant 0 : index
    %c0_39 = arith.constant 0 : index
    %c0_40 = arith.constant 0 : index
    %46 = vector.load %arg8[%c0_37, %c0_38, %c0_39, %c0_40] : memref<1x1x16x16xf32, #tpu.memory_space<vmem>>, vector<1x1x16x16xf32>
    %47 = vector.shape_cast %46 : vector<1x1x16x16xf32> to vector<16x16xf32>
    %48 = vector.shape_cast %45 : vector<16x16xf32> to vector<1x1x16x16xf32>
    tpu.vector_store %arg8[%c0_37, %c0_38, %c0_39, %c0_40], %48 {strides = array<i32>} : memref<1x1x16x16xf32, #tpu.memory_space<vmem>>, vector<1x1x16x16xf32>,
    return
  }
  func.func @transform_0(%arg0: i32, %arg1: i32) -> (i32, i32, i32, i32) {
    %c0_i32 = arith.constant 0 : i32
    %c0_i32_0 = arith.constant 0 : i32
    %c0_i32_1 = arith.constant 0 : i32
    %c0_i32_2 = arith.constant 0 : i32
    return %arg0, %c0_i32, %c0_i32_0, %c0_i32_1 : i32, i32, i32, i32
  }
  func.func @transform_1(%arg0: i32, %arg1: i32) -> (i32, i32) {
    %c0_i32 = arith.constant 0 : i32
    %c0_i32_0 = arith.constant 0 : i32
    %c0_i32_1 = arith.constant 0 : i32
    return %c0_i32, %c0_i32_0 : i32, i32
  }
  func.func @transform_2(%arg0: i32, %arg1: i32) -> (i32, i32) {
    %c0_i32 = arith.constant 0 : i32
    %c0_i32_0 = arith.constant 0 : i32
    %c0_i32_1 = arith.constant 0 : i32
    return %c0_i32, %c0_i32_0 : i32, i32
  }
  func.func @transform_3(%arg0: i32, %arg1: i32) -> (i32, i32) {
    %c0_i32 = arith.constant 0 : i32
    %c0_i32_0 = arith.constant 0 : i32
    %c0_i32_1 = arith.constant 0 : i32
    return %c0_i32, %c0_i32_0 : i32, i32
  }
  func.func @transform_4(%arg0: i32, %arg1: i32) -> (i32, i32) {
    %c0_i32 = arith.constant 0 : i32
    %c0_i32_0 = arith.constant 0 : i32
    %c0_i32_1 = arith.constant 0 : i32
    return %c0_i32, %c0_i32_0 : i32, i32
  }
  func.func @transform_5(%arg0: i32, %arg1: i32) -> (i32, i32) {
    %c0_i32 = arith.constant 0 : i32
    %c0_i32_0 = arith.constant 0 : i32
    %c0_i32_1 = arith.constant 0 : i32
    return %c0_i32, %c0_i32_0 : i32, i32
  }
  func.func @transform_6(%arg0: i32, %arg1: i32) -> (i32, i32, i32, i32) {
    %c0_i32 = arith.constant 0 : i32
    %c0_i32_0 = arith.constant 0 : i32
    %c0_i32_1 = arith.constant 0 : i32
    return %arg0, %arg1, %c0_i32, %c0_i32_0 : i32, i32, i32, i32
  }
}

module attributes {stable_mosaic.version = 11 : i64} {
  func.func @kernel(%arg0: i32, %arg1: i32, %arg2: memref<1x3x16x16xf32, #tpu.memory_space<vmem>>, %arg3: memref<16x16xf32, #tpu.memory_space<vmem>>, %arg4: memref<16x16xbf16, #tpu.memory_space<vmem>>, %arg5: memref<16x16xbf16, #tpu.memory_space<vmem>>, %arg6: memref<16x16xbf16, #tpu.memory_space<vmem>>, %arg7: memref<16x16xbf16, #tpu.memory_space<vmem>>, %arg8: memref<1x1x16x16xf32, #tpu.memory_space<vmem>>) attributes {dimension_semantics = [#tpu.dimension_semantics<parallel>, #tpu.dimension_semantics<parallel>], iteration_bounds = array<i64: 2, 3>, scalar_prefetch = 0 : i64, scratch_operands = 0 : i64, tpu.core_type = #tpu.core_type<tc>, window_params = [{transform_indices = @transform_0, window_bounds = array<i64: 1, 3, 16, 16>}, {pipeline_mode = #tpu.pipeline_mode<synchronous>, transform_indices = @transform_1, window_bounds = array<i64: 16, 16>}, {pipeline_mode = #tpu.pipeline_mode<synchronous>, transform_indices = @transform_2, window_bounds = array<i64: 16, 16>}, {pipeline_mode = #tpu.pipeline_mode<synchronous>, transform_indices = @transform_3, window_bounds = array<i64: 16, 16>}, {pipeline_mode = #tpu.pipeline_mode<synchronous>, transform_indices = @transform_4, window_bounds = array<i64: 16, 16>}, {pipeline_mode = #tpu.pipeline_mode<synchronous>, transform_indices = @transform_5, window_bounds = array<i64: 16, 16>}, {transform_indices = @transform_6, window_bounds = array<i64: 1, 1, 16, 16>}]} {
    %c0_i32 = arith.constant 0 : i32
    %0 = arith.cmpi eq, %arg1, %c0_i32 : i32
    %c1_i32 = arith.constant 1 : i32
    %1 = arith.cmpi eq, %arg1, %c1_i32 : i32
    %cst = arith.constant 0.584475815 : f32
    %cst_0 = arith.constant 0.584475815 : f32
    %2 = arith.select %1, %cst, %cst_0 : f32
    %cst_1 = arith.constant 0.562828541 : f32
    %3 = arith.select %0, %cst_1, %2 : f32
    %c0 = arith.constant 0 : index
    %c0_2 = arith.constant 0 : index
    %c0_3 = arith.constant 0 : index
    %c0_4 = arith.constant 0 : index
    %4 = vector.load %arg2[%c0, %c0_2, %c0_3, %c0_4] : memref<1x3x16x16xf32, #tpu.memory_space<vmem>>, vector<1x1x16x16xf32>
    %5 = vector.shape_cast %4 : vector<1x1x16x16xf32> to vector<16x16xf32>
    %6 = vector.broadcast %3 : f32 to vector<16x16xf32>
    %7 = arith.mulf %6, %5 : vector<16x16xf32>
    %c0_i32_5 = arith.constant 0 : i32
    %8 = arith.cmpi eq, %arg1, %c0_i32_5 : i32
    %c1_i32_6 = arith.constant 1 : i32
    %9 = arith.cmpi eq, %arg1, %c1_i32_6 : i32
    %cst_7 = arith.constant 0.000000e+00 : f32
    %cst_8 = arith.constant -0.194825277 : f32
    %10 = arith.select %9, %cst_7, %cst_8 : f32
    %cst_9 = arith.constant 0.194825277 : f32
    %11 = arith.select %8, %cst_9, %10 : f32
    %c0_10 = arith.constant 0 : index
    %c1 = arith.constant 1 : index
    %c0_11 = arith.constant 0 : index
    %c0_12 = arith.constant 0 : index
    %12 = vector.load %arg2[%c0_10, %c1, %c0_11, %c0_12] : memref<1x3x16x16xf32, #tpu.memory_space<vmem>>, vector<1x1x16x16xf32>
    %13 = vector.shape_cast %12 : vector<1x1x16x16xf32> to vector<16x16xf32>
    %14 = vector.broadcast %11 : f32 to vector<16x16xf32>
    %15 = arith.mulf %14, %13 : vector<16x16xf32>
    %16 = arith.addf %7, %15 : vector<16x16xf32>
    %c0_i32_13 = arith.constant 0 : i32
    %17 = arith.cmpi eq, %arg1, %c0_i32_13 : i32
    %c1_i32_14 = arith.constant 1 : i32
    %18 = arith.cmpi eq, %arg1, %c1_i32_14 : i32
    %cst_15 = arith.constant -0.108236261 : f32
    %cst_16 = arith.constant 0.0649417564 : f32
    %19 = arith.select %18, %cst_15, %cst_16 : f32
    %cst_17 = arith.constant 0.0432945043 : f32
    %20 = arith.select %17, %cst_17, %19 : f32
    %c0_18 = arith.constant 0 : index
    %c2 = arith.constant 2 : index
    %c0_19 = arith.constant 0 : index
    %c0_20 = arith.constant 0 : index
    %21 = vector.load %arg2[%c0_18, %c2, %c0_19, %c0_20] : memref<1x3x16x16xf32, #tpu.memory_space<vmem>>, vector<1x1x16x16xf32>
    %22 = vector.shape_cast %21 : vector<1x1x16x16xf32> to vector<16x16xf32>
    %23 = vector.broadcast %20 : f32 to vector<16x16xf32>
    %24 = arith.mulf %23, %22 : vector<16x16xf32>
    %25 = arith.addf %16, %24 : vector<16x16xf32>
    %c0_21 = arith.constant 0 : index
    %c0_22 = arith.constant 0 : index
    %26 = vector.load %arg3[%c0_21, %c0_22] : memref<16x16xf32, #tpu.memory_space<vmem>>, vector<16x16xf32>
    %27 = arith.mulf %25, %26 : vector<16x16xf32>
    %28 = arith.truncf %27 : vector<16x16xf32> to vector<16x16xbf16>
    %c0_23 = arith.constant 0 : index
    %c0_24 = arith.constant 0 : index
    %29 = vector.load %arg4[%c0_23, %c0_24] : memref<16x16xbf16, #tpu.memory_space<vmem>>, vector<16x16xbf16>
    %cst_25 = arith.constant dense<0.000000e+00> : vector<16x16xf32>
    %30 = tpu.matmul %28, %29, %cst_25 {dimension_numbers = #tpu.dot_dimension_numbers<[1], [0], [0], [1], [0, 0, 1, 1], [], []>} : vector<16x16xbf16>, vector<16x16xbf16>, vector<16x16xf32> -> vector<16x16xf32>
    %c0_26 = arith.constant 0 : index
    %c0_27 = arith.constant 0 : index
    %31 = vector.load %arg5[%c0_26, %c0_27] : memref<16x16xbf16, #tpu.memory_space<vmem>>, vector<16x16xbf16>
    %cst_28 = arith.constant dense<0.000000e+00> : vector<16x16xf32>
    %32 = tpu.matmul %28, %31, %cst_28 {dimension_numbers = #tpu.dot_dimension_numbers<[1], [0], [0], [1], [0, 0, 1, 1], [], []>} : vector<16x16xbf16>, vector<16x16xbf16>, vector<16x16xf32> -> vector<16x16xf32>
    %c0_29 = arith.constant 0 : index
    %c0_30 = arith.constant 0 : index
    %33 = vector.load %arg6[%c0_29, %c0_30] : memref<16x16xbf16, #tpu.memory_space<vmem>>, vector<16x16xbf16>
    %34 = arith.truncf %30 : vector<16x16xf32> to vector<16x16xbf16>
    %cst_31 = arith.constant dense<0.000000e+00> : vector<16x16xf32>
    %35 = tpu.matmul %33, %34, %cst_31 {dimension_numbers = #tpu.dot_dimension_numbers<[1], [0], [0], [1], [0, 0, 1, 1], [], []>} : vector<16x16xbf16>, vector<16x16xbf16>, vector<16x16xf32> -> vector<16x16xf32>
    %c0_32 = arith.constant 0 : index
    %c0_33 = arith.constant 0 : index
    %36 = vector.load %arg7[%c0_32, %c0_33] : memref<16x16xbf16, #tpu.memory_space<vmem>>, vector<16x16xbf16>
    %37 = arith.truncf %32 : vector<16x16xf32> to vector<16x16xbf16>
    %cst_34 = arith.constant dense<0.000000e+00> : vector<16x16xf32>
    %38 = tpu.matmul %36, %37, %cst_34 {dimension_numbers = #tpu.dot_dimension_numbers<[1], [0], [0], [1], [0, 0, 1, 1], [], []>} : vector<16x16xbf16>, vector<16x16xbf16>, vector<16x16xf32> -> vector<16x16xf32>
    %39 = arith.subf %35, %38 : vector<16x16xf32>
    %cst_35 = arith.constant 0.000000e+00 : f32
    %40 = vector.broadcast %cst_35 : f32 to vector<16x16xf32>
    %41 = arith.subf %40, %39 : vector<16x16xf32>
    %42 = math.exp %41 : vector<16x16xf32>
    %cst_36 = arith.constant 1.000000e+00 : f32
    %43 = vector.broadcast %cst_36 : f32 to vector<16x16xf32>
    %44 = arith.addf %43, %42 : vector<16x16xf32>
    %45 = tpu.reciprocal %44 {approx = true} : vector<16x16xf32> -> vector<16x16xf32>
    %c0_37 = arith.constant 0 : index
    %c0_38 = arith.constant 0 : index
    %c0_39 = arith.constant 0 : index
    %c0_40 = arith.constant 0 : index
    %46 = vector.load %arg8[%c0_37, %c0_38, %c0_39, %c0_40] : memref<1x1x16x16xf32, #tpu.memory_space<vmem>>, vector<1x1x16x16xf32>
    %47 = vector.shape_cast %46 : vector<1x1x16x16xf32> to vector<16x16xf32>
    %48 = vector.shape_cast %45 : vector<16x16xf32> to vector<1x1x16x16xf32>
    tpu.vector_store %arg8[%c0_37, %c0_38, %c0_39, %c0_40], %48 {strides = array<i32>} : memref<1x1x16x16xf32, #tpu.memory_space<vmem>>, vector<1x1x16x16xf32>,
    return
  }
  func.func @transform_0(%arg0: i32, %arg1: i32) -> (i32, i32, i32, i32) {
    %c0_i32 = arith.constant 0 : i32
    %c0_i32_0 = arith.constant 0 : i32
    %c0_i32_1 = arith.constant 0 : i32
    %c0_i32_2 = arith.constant 0 : i32
    return %arg0, %c0_i32, %c0_i32_0, %c0_i32_1 : i32, i32, i32, i32
  }
  func.func @transform_1(%arg0: i32, %arg1: i32) -> (i32, i32) {
    %c0_i32 = arith.constant 0 : i32
    %c0_i32_0 = arith.constant 0 : i32
    %c0_i32_1 = arith.constant 0 : i32
    return %c0_i32, %c0_i32_0 : i32, i32
  }
  func.func @transform_2(%arg0: i32, %arg1: i32) -> (i32, i32) {
    %c0_i32 = arith.constant 0 : i32
    %c0_i32_0 = arith.constant 0 : i32
    %c0_i32_1 = arith.constant 0 : i32
    return %c0_i32, %c0_i32_0 : i32, i32
  }
  func.func @transform_3(%arg0: i32, %arg1: i32) -> (i32, i32) {
    %c0_i32 = arith.constant 0 : i32
    %c0_i32_0 = arith.constant 0 : i32
    %c0_i32_1 = arith.constant 0 : i32
    return %c0_i32, %c0_i32_0 : i32, i32
  }
  func.func @transform_4(%arg0: i32, %arg1: i32) -> (i32, i32) {
    %c0_i32 = arith.constant 0 : i32
    %c0_i32_0 = arith.constant 0 : i32
    %c0_i32_1 = arith.constant 0 : i32
    return %c0_i32, %c0_i32_0 : i32, i32
  }
  func.func @transform_5(%arg0: i32, %arg1: i32) -> (i32, i32) {
    %c0_i32 = arith.constant 0 : i32
    %c0_i32_0 = arith.constant 0 : i32
    %c0_i32_1 = arith.constant 0 : i32
    return %c0_i32, %c0_i32_0 : i32, i32
  }
  func.func @transform_6(%arg0: i32, %arg1: i32) -> (i32, i32, i32, i32) {
    %c0_i32 = arith.constant 0 : i32
    %c0_i32_0 = arith.constant 0 : i32
    %c0_i32_1 = arith.constant 0 : i32
    return %arg0, %arg1, %c0_i32, %c0_i32_0 : i32, i32, i32, i32
  }
}

</mosaic_0001>

<bundles_post_ra>
// kernel: tpu_custom_call.1
= control target key start
LH: loop header
LB: loop body
LE: loop exit
PB: predicated region body
PF: predicated region fallthrough
CT: control target
= control target key end

     0   :  { %s1578_s0 = inlined_call_operand.hbm [shape: f32[2,3,16,16], index: 0, kind: input, shape index: {}]   ;;  %s1579_s1 = inlined_call_operand.hbm [shape: f32[16,16], index: 1, kind: input, shape index: {}]   ;;  %s1580_s2 = inlined_call_operand.hbm [shape: bf16[16,16], index: 2, kind: input, shape index: {}]   ;;  %s1581_s3 = inlined_call_operand.vmem [shape: bf16[16,16], index: 3, kind: input, shape index: {}]   ;;  %s1582_s4 = inlined_call_operand.hbm [shape: bf16[16,16], index: 4, kind: input, shape index: {}]   ;;  %s1583_s5 = inlined_call_operand.vmem [shape: bf16[16,16], index: 5, kind: input, shape index: {}]   ;;  %s1584_s6 = inlined_call_operand.hbm [shape: f32[2,3,16,16], index: 6, kind: output, shape index: {}]  }
   0x1   :  { %1598 = sst [smem:[#allocation20_spill]] %s1579_s1 }
   0x2   :  { %1599 = sst [smem:[#allocation21_spill]] %s1580_s2 }
   0x3   :  { %1600 = sst [smem:[#allocation22_spill]] %s1582_s4 }
   0x4   :  { %1601 = sst [smem:[#allocation23_spill]] %s1584_s6 }
   0x5   :  { %11 = vsyncpa [#allocation3], 0 }
   0x6   :  { %13 = vsyncpa [#allocation3 + $0x1], 0 }
   0x7   :  { %14 = vsyncpa [#allocation6], 0 }
   0x8   :  { %15 = vsyncpa [#allocation9], 0 }
   0x9   :  { %16 = vsyncpa [#allocation4], 0 }
   0xa   :  { %18 = vsyncpa [#allocation4 + $0x1], 0  ;;  %s1227_s21 = smov 0   ;;  %s1229_s22 = smov 0  }
   0xb   :  { %s1231_s23 = smov 0   ;;  %s1233_s24 = smov 0  }
   0xc   :  { %s1235_s25 = smov 0   ;;  %s1237_s26 = smov 0  }
   0xd   :  { %s1239_s27 = smov 0   ;;  %s1241_s28 = smov 0  }
   0xe   :  { %s1243_s29 = smov 0   ;;  %s1245_s30 = smov 0  }
   0xf   :  { %s1247_s7 = smov 0  }
  0x10 LB: > { %1602 = sst [smem:[#allocation15_spill]] %s1137_s21  ;;  %s714_s8 = sadd.s32 4294967295, %s1177_s7   ;;  %s1177_s7 = sphi %s1247_s7, %s24_s7   ;;  %s1173_s30 = sphi %s1245_s30, %s1642_s30   ;;  %s1169_s29 = sphi %s1243_s29, %s1641_s29   ;;  %s1165_s28 = sphi %s1241_s28, %s1640_s28   ;;  %s1161_s27 = sphi %s1239_s27, %s1639_s27   ;;  %s1157_s26 = sphi %s1237_s26, %s1638_s26   ;;  %s1153_s25 = sphi %s1235_s25, %s1637_s25   ;;  %s1149_s24 = sphi %s1233_s24, %s1636_s24   ;;  %s1145_s23 = sphi %s1231_s23, %s1635_s23   ;;  %s1141_s22 = sphi %s1229_s22, %s1634_s22   ;;  %s1137_s21 = sphi %s1227_s21, %s1633_s21  }
  0x11   : > { %1603 = sst [smem:[#allocation16_spill]] %s1141_s22  ;;  %s715_s9 = sadd.s32 4294967294, %s1177_s7  }
  0x12   : > { %1604 = sst [smem:[#allocation17_spill]] %s1165_s28  ;;  %p56_p0 = scmp.ne.s32.totalorder %s1153_s25, %s1149_s24 }
  0x13   : > { %p1283_p1 = scmp.eq.s32.totalorder %s714_s8, 0  ;;  %p186_p2 = scmp.ne.s32.totalorder %s1145_s23, %s1141_s22 }
  0x14   : > { %p187_p4 = scmp.eq.s32.totalorder %s714_s8, 5  ;;  %p192_p5 = scmp.ne.s32.totalorder %s1141_s22, %s1137_s21 }
  0x15   : > { %s1605_s10 = scalar_select %p1283_p1, 1, 0 }
  0x16   : > { %p1292_p3 = por %p1283_p1, %p56_p0  ;;  %p193_p6 = scmp.eq.s32.totalorder %s715_s9, 5 }
  0x17   : > { %p1298_p7 = por %p187_p4, %p186_p2  ;;  %p716_p8 = scmp.ge.s32.totalorder %s1177_s7, 1 }
  0x18   : > { %s1606_s12 = scalar_select %p1292_p3, 1, 0 }
  0x19   : > { %s1607_s13 = scalar_select %p1298_p7, 1, 0 }
  0x1a   : > { %p1303_p9 = por %p193_p6, %p192_p5  ;;  %p200_p10 = scmp.lt.s32.totalorder %s1177_s7, 7 }
  0x1b   : > { %1608 = sst [smem:[#allocation18_spill]] %s1607_s13  ;;  %s1179_s16 = smov [#allocation5]  }
  0x1c   : > { %s1609_s14 = scalar_select %p1303_p9, 1, 0 }
  0x1d   : > { %p1308_p11 = pnand %p716_p8, %p200_p10  ;;  %s212_s17 = sshll.u32 %s1179_s16, 4  ;;  %s213_s17 = int_to_ptr.vmem [resolvable:$true] %s212_s17 }
  0x1e   : > { %1610 = sst [smem:[#allocation19_spill]] %s1609_s14  ;;  %s1180_s19 = smov [#allocation7]  }
  0x1f   : > { %s1611_s15 = scalar_select %p1308_p11, 1, 0 }
  0x20   : > { %p796_p12 = pneg %p1308_p11  ;;  %s225_s20 = sshll.u32 %s1180_s19, 4  ;;  %s1320_s20 = int_to_ptr.vmem [resolvable:$true] %s225_s20 }
  0x21   : > { %s1613_s1 = sld [smem:[#allocation20_spill]] }
  0x22   : > { %p1316_p13 = pnand %p796_p12, %p1283_p1 }
  0x24   : > { %p1330_p2 = pneg %p1316_p13 }
  0x27   : > { %s933_s9 = scalar_lea.hbm %s1613_s1, 256 }
  0x28   : > { %p934_p0 = scmp.ne.s32.totalorder %s1613_s1, %s933_s9  ;;  %p940_p6 = scmp.lt.u32.totalorder %s933_s9, %s1613_s1 }
  0x2a   : > { %p936_p4 = pnand %p1330_p2, %p934_p0 }
  0x2c   : > { %p937_p5 = pneg %p936_p4 }
  0x2e   : > { %p942_p8 = pnand %p940_p6, %p937_p5 }
  0x30   : > { %945 = shalt.err (!%p942_p8)
}
  0x31   : > { %s946_s24 = scalar_lea.vmem %s213_s17, 256  ;;  %p954_p7 = scmp.lt.s32.totalorder %s213_s17, %s213_s17 }
  0x32   : > { %p947_p10 = scmp.ne.s32.totalorder %s213_s17, %s946_s24  ;;  %p955_p1 = scmp.lt.s32.totalorder %s946_s24, %s946_s24 }
  0x34   : > { %p949_p12 = pnand %p947_p10, %p1330_p2  ;;  %p956_p3 = por %p955_p1, %p954_p7 }
  0x36   : > { %p950_p9 = pneg %p949_p12 }
  0x38   : > { %p957_p11 = pnand %p956_p3, %p950_p9 }
  0x3a   : > { %960 = shalt.err (!%p957_p11)
}
  0x3b   : > { %s1596_s11 = smov 128   ;;  %s1597_s14 = smov 8  }
  0x3c   : > { %799 = dma.hbm_to_vmem [thread:$0]  (!%p1316_p13), %s1613_s1, 256, %s213_s17, [#allocation6], %s1596_s11, %s1596_s11, %s1597_s14  }
  0x3d   : > { %s1615_s2 = sld [smem:[#allocation21_spill]] }
  0x43   : > { %s961_s6 = scalar_lea.hbm %s1615_s2, 128 }
  0x44   : > { %p962_p1 = scmp.ne.s32.totalorder %s1615_s2, %s961_s6  ;;  %p968_p9 = scmp.lt.u32.totalorder %s961_s6, %s1615_s2 }
  0x46   : > { %p964_p3 = pnand %p962_p1, %p1330_p2 }
  0x48   : > { %p965_p7 = pneg %p964_p3 }
  0x4a   : > { %p970_p11 = pnand %p968_p9, %p965_p7 }
  0x4c   : > { %973 = shalt.err (!%p970_p11)
}
  0x4d   : > { %s974_s17 = scalar_lea.vmem %s1320_s20, 128  ;;  %p982_p6 = scmp.lt.s32.totalorder %s1320_s20, %s1320_s20 }
  0x4e   : > { %p975_p0 = scmp.ne.s32.totalorder %s1320_s20, %s974_s17  ;;  %p983_p8 = scmp.lt.s32.totalorder %s974_s17, %s974_s17 }
  0x50   : > { %p977_p4 = pnand %p975_p0, %p1330_p2  ;;  %p984_p10 = por %p983_p8, %p982_p6 }
  0x52   : > { %p978_p5 = pneg %p977_p4 }
  0x54   : > { %p985_p12 = pnand %p984_p10, %p978_p5 }
  0x56   : > { %988 = shalt.err (!%p985_p12)
}
  0x57   : > { %s1183_s13 = smov 64   ;;  %s1184_s6 = smov 4  }
  0x58   : > { %802 = dma.hbm_to_vmem [thread:$0]  (!%p1316_p13), %s1615_s2, 128, %s1320_s20, [#allocation6], %s1183_s13, %s1183_s13, %s1184_s6  }
  0x59   : > { %s1185_s21 = smov [#allocation8]   ;;  %s1616_s4 = sld [smem:[#allocation22_spill]] }
  0x5a   : > { %s241_s8 = sshll.u32 %s1185_s21, 4  ;;  %s242_s8 = int_to_ptr.vmem [resolvable:$true] %s241_s8 }
  0x5f   : > { %s989_s24 = scalar_lea.hbm %s1616_s4, 128 }
  0x60   : > { %p990_p1 = scmp.ne.s32.totalorder %s1616_s4, %s989_s24  ;;  %p996_p9 = scmp.lt.u32.totalorder %s989_s24, %s1616_s4 }
  0x62   : > { %p992_p3 = pnand %p990_p1, %p1330_p2 }
  0x64   : > { %p993_p7 = pneg %p992_p3 }
  0x66   : > { %p998_p11 = pnand %p996_p9, %p993_p7 }
  0x68   : > { %1001 = shalt.err (!%p998_p11)
}
  0x69   : > { %s1002_s20 = scalar_lea.vmem %s242_s8, 128  ;;  %p1010_p6 = scmp.lt.s32.totalorder %s242_s8, %s242_s8 }
  0x6a   : > { %p1003_p0 = scmp.ne.s32.totalorder %s242_s8, %s1002_s20  ;;  %p1011_p8 = scmp.lt.s32.totalorder %s1002_s20, %s1002_s20 }
  0x6c   : > { %p1005_p4 = pnand %p1003_p0, %p1330_p2  ;;  %p1012_p10 = por %p1011_p8, %p1010_p6 }
  0x6e   : > { %p1006_p5 = pneg %p1005_p4 }
  0x70   : > { %p1013_p12 = pnand %p1012_p10, %p1006_p5 }
  0x72   : > { %1016 = shalt.err (!%p1013_p12)
}
  0x73   : > { %805 = dma.hbm_to_vmem [thread:$0]  (!%p1316_p13), %s1616_s4, 128, %s242_s8, [#allocation9], %s1183_s13, %s1183_s13, %s1184_s6  }
  0x74   : > { %s33_s1 = sadd.s32 1, %s1169_s29  ;;  %s36_s16 = sadd.s32 1, %s1173_s30 }
  0x75   : > { %p34_p2 = scmp.ge.s32.totalorder %s33_s1, 3  ;;  %s43_s18 = sadd.s32 1, %s1157_s26 }
  0x76   : > { %p50_p1 = scmp.ne.s32.totalorder %s1157_s26, %s1153_s25  ;;  %p51_p3 = scmp.eq.s32.totalorder %s1177_s7, 0 }
  0x77   : > { %s1644_s1 = smov (%p34_p2, %s33_s1), 0  ;;  %s1646_s16 = smov (!%p34_p2, %s36_s16), %s1173_s30 }
  0x78   : > { %s172_s14 = ssub.s32 %s1169_s29, %s1644_s1  ;;  %p38_p7 = scmp.ge.s32.totalorder %s1646_s16, 2 }
  0x79   : > { %p817_p9 = scmp.lt.s32.totalorder %s1177_s7, 6  ;;  %p1402_p13 = por %p51_p3, %p50_p1 }
  0x7a   : > { %s258_s6 = sand.u32 1, %s1157_s26   ;;  %s1648_s16 = smov (%p38_p7, %s1646_s16), 0 }
  0x7b   : > { %s776_s28 = smul.u32 48, %s258_s6  ;;  %s40_s21 = ssub.s32 %s1173_s30, %s1648_s16 }
  0x7c   : > { %s777_s8 = smul.u32 768, %s1173_s30  ;;  %p41_p11 = scmp.eq.s32.totalorder %s40_s21, 0 }
  0x7d   : > { %s173_s9 = sor.u32 %s172_s14, %s40_s21  ;;  %s1618_s24 = sadd.s32 1, %s1145_s23 }
  0x7e   : > { %p174_p0 = scmp.eq.s32.totalorder %s173_s9, 0  ;;  %s1423_s22 = scalar_lea.hbm %s1578_s0, %s777_s8 }
  0x7f   : > { %s1413_s19 = scalar_select %p41_p11, %s1157_s26, %s43_s18  }
  0x80   : > { %s1418_s17 = scalar_select %p174_p0, %s1145_s23, %s1618_s24  }
  0x81   : > { %s262_s2 = scalar_lea.vmem [#allocation2], %s776_s28  ;;  %p1431_p4 = pnand %p817_p9, %p1402_p13 }
  0x82   : > { %s269_s4 = sshll.u32 %s262_s2, 4  ;;  %s1435_s14 = scalar_lea.sflag [#allocation3], %s258_s6  ;;  %s1425_s4 = int_to_ptr.vmem [resolvable:$true] %s269_s4 }
  0x83   : > { %s1017_s21 = scalar_lea.hbm %s1423_s22, 768  ;;  %p1019_p6 = pneg %p1431_p4 }
  0x84   : > { %p1018_p5 = scmp.ne.s32.totalorder %s1423_s22, %s1017_s21  ;;  %s1022_s13 = scalar_lea.hbm %s1578_s0, 1536 }
  0x85   : > { %p1023_p12 = scmp.lt.u32.totalorder %s1423_s22, %s1578_s0  ;;  %p1024_p2 = scmp.lt.u32.totalorder %s1022_s13, %s1017_s21 }
  0x86   : > { %p1020_p8 = pnand %p1019_p6, %p1018_p5  ;;  %p1026_p3 = scmp.lt.u32.totalorder %s1017_s21, %s1423_s22 }
  0x87   : > { %p1025_p1 = por %p1024_p2, %p1023_p12 }
  0x88   : > { %p1021_p10 = pneg %p1020_p8 }
  0x89   : > { %p1027_p7 = por %p1026_p3, %p1025_p1 }
  0x8b   : > { %p1028_p9 = pnand %p1027_p7, %p1021_p10 }
  0x8d   : > { %1031 = shalt.err (!%p1028_p9)
}
  0x8e   : > { %s1032_s6 = scalar_lea.vmem %s1425_s4, 768  ;;  %s1186_s24 = smov [#allocation2]  }
  0x8f   : > { %p1033_p13 = scmp.ne.s32.totalorder %s1425_s4, %s1032_s6  ;;  %s1037_s20 = sshll.u32 %s1186_s24, 4  ;;  %s1038_s20 = int_to_ptr.vmem [resolvable:$false] %s1037_s20 }
  0x90   : > { %s1039_s11 = scalar_lea.vmem %s1038_s20, 1536  ;;  %p1040_p5 = scmp.lt.s32.totalorder %s1425_s4, %s1038_s20 }
  0x91   : > { %p1035_p11 = pnand %p1033_p13, %p1019_p6  ;;  %p1041_p8 = scmp.lt.s32.totalorder %s1039_s11, %s1032_s6 }
  0x93   : > { %p1036_p0 = pneg %p1035_p11  ;;  %p1042_p12 = por %p1041_p8, %p1040_p5 }
  0x95   : > { %p1043_p2 = pnand %p1042_p12, %p1036_p0 }
  0x97   : > { %1046 = shalt.err (!%p1043_p2)
}
  0x98   : > { %s1620_s21 = smov 8   ;;  %s1621_s2 = smov 128  }
  0x99   : > { %809 = dma.hbm_to_vmem [thread:$0]  (!%p1431_p4), %s1423_s22, 768, %s1425_s4, %s1435_s14, %s1621_s2, %s1621_s2, %s1620_s21  }
  0x9a   : > { %p1622_p6 = scmp.ne.s32.totalorder %s1611_s15, 0 }
  0x9b   : > { %s283_s28 = sand.u32 (!%p1622_p6), 1, %s1153_s25   ;;  %p1623_p10 = scmp.ne.s32.totalorder (!%p1622_p6), %s1606_s12, 0 }
  0x9c   : > { %281 = sbr.rel (%p1622_p6) target bundleno = 664 (0x298), region = 44  ;;  %s284_s8 = scalar_lea.sflag (!%p1622_p6), [#allocation3], %s283_s28 }
  0x9d   : > { %s778_s13 = smul.u32 (!%p1622_p6), 48, %s283_s28 }
  0x9f   : > { %s1469_s9 = scalar_lea.vmem (!%p1622_p6), [#allocation2], %s778_s13 }
  0xa3   : > { %1120 = dma.done.wait (%p1623_p10), %s284_s8, 768  }
  0xa4   : > { %1122 = vsyncadd (%p1623_p10), %s284_s8, 4294966528  ;;  %p1624_p1 = scmp.ne.s32.totalorder %s1605_s10, 0 }
  0xa6   : > { %1124 = dma.done.wait (%p1624_p1), [#allocation6], 384  }
  0xa7   : > { %1126 = vsyncadd (%p1624_p1), [#allocation6], 4294966912 }
  0xa8   : > { %1128 = dma.done.wait (%p1624_p1), [#allocation9], 128  }
  0xa9   : > { %1130 = vsyncadd (%p1624_p1), [#allocation9], 4294967168  ;;  %p329_p4 = scmp.eq.s32.totalorder %s1161_s27, 0  ;;  %p336_p3 = scmp.eq.s32.totalorder %s1161_s27, 1  ;;  %v1187_v0 = vmov 0.0   ;;  %vm1188_vm0 = vmmov 0  }
  0xaa   : > { %752 = vmatprep.subr.bf16.mxu0 %v1187_v0  ;;  %758 = vmatprep.subr.bf16.mxu1 %v1187_v0  ;;  %v921_v1 = vld [vmem:[#allocation7] sm:$0xff]   ;;  %v922_v4 = vld [vmem:[%s1581_s3] sm:$0xff]   ;;  %v332_v7 = vld [vmem:[%s1469_s9 + $0x8] sm:$0xff]  ;;  %vm370_vm1 = vcmask 130048   ;;  %s1625_s6 = sld [smem:[#allocation16_spill]]  ;;  %s1626_s24 = sld [smem:[#allocation17_spill]] }
  0xab   : > { %754 = vmatprep.mubr.msk.bf16.mxu0 %vm1188_vm0, %v1187_v0  ;;  %760 = vmatprep.mubr.msk.bf16.mxu1 %vm1188_vm0, %v1187_v0  ;;  %s330_s4 = scalar_select %p329_p4, 0.56282854, 0.5844758  ;;  %v331_v6 = vld [vmem:[%s1469_s9] sm:$0xff]  ;;  %v727_v8 = vld [vmem:[%s1469_s9 + $0x10] sm:$0xff] }
  0xac   : > { %s337_s12 = scalar_select %p336_p3, 0.0, -0.19482528  ;;  %753 = vmatpush3.bf16.msra.mxu0 %v921_v1  ;;  %759 = vmatpush3.bf16.msra.mxu1 %v922_v4  ;;  %v728_v11 = vld [vmem:[%s1469_s9 + $0x18] sm:$0xff]  ;;  %v729_v13 = vld [vmem:[%s1469_s9 + $0x20] sm:$0xff]  ;;  %v730_v14 = vld [vmem:[%s1469_s9 + $0x28] sm:$0xff] }
  0xad   : > { %s347_s10 = scalar_select %p336_p3, -0.10823626, 0.06494176  ;;  %v333_v2 = vstv %s330_s4  ;;  %764 = vmatprep.subr.bf16.mxu0 %v1187_v0  ;;  %770 = vmatprep.subr.bf16.mxu1 %v1187_v0  ;;  %v357_v20 = vld [vmem:[#allocation5] sm:$0xff]  ;;  %v358_v22 = vld [vmem:[#allocation5 + $0x8] sm:$0xff] }
  0xae   : > { %s1650_s12 = smov (%p329_p4, %s337_s12), 0.19482528  ;;  %v334_v9 = vmul.f32 %v333_v2, %v331_v6  ;;  %v335_v10 = vmul.f32 %v333_v2, %v332_v7  ;;  %v923_v37 = vld [vmem:[#allocation8] sm:$0xff]   ;;  %v924_v38 = vld [vmem:[%s1583_s5] sm:$0xff]   ;;  %s1627_s2 = sld [smem:[#allocation18_spill]] }
  0xaf   : > { %s1652_s10 = smov (%p329_p4, %s347_s10), 0.043294504  ;;  %v342_v3 = vstv %s1650_s12  ;;  %s740_s28 = sshll.u32 %s1161_s27, 1 }
  0xb0   : > { %v352_v5 = vstv %s1652_s10  ;;  %v343_v12 = vmul.f32 %v727_v8, %v342_v3  ;;  %v344_v15 = vmul.f32 %v728_v11, %v342_v3  ;;  %s325_s20 = sand.u32 1, %s1625_s6   ;;  %s779_s11 = smul.u32 6, %s1626_s24 }
  0xb1   : > { %v353_v16 = vmul.f32 %v729_v13, %v352_v5  ;;  %v354_v17 = vmul.f32 %v730_v14, %v352_v5  ;;  %s726_s21 = sshll.u32 %s325_s20, 4  ;;  %s1628_s15 = sld [smem:[#allocation23_spill]] }
  0xb2   : > { %v345_v18 = vadd.f32 %v343_v12, %v334_v9  ;;  %v346_v19 = vadd.f32 %v344_v15, %v335_v10  ;;  %s595_s13 = sadd.s32 %s779_s11, %s740_s28  ;;  %s327_s9 = scalar_lea.vmem [#allocation10], %s726_s21 }
  0xb3   : > { %s741_s8 = sshll.u32 %s595_s13, 7  ;;  %s598_s4 = sshll.u32 %s327_s9, 4  ;;  %s1513_s4 = int_to_ptr.vmem [resolvable:$true] %s598_s4 }
  0xb4   : > { %v355_v21 = vadd.f32 %v353_v16, %v345_v18  ;;  %v356_v23 = vadd.f32 %v354_v17, %v346_v19  ;;  %s1517_s27 = scalar_lea.sflag [#allocation4], %s325_s20  ;;  %s1047_s18 = scalar_lea.vmem %s1513_s4, 256 }
  0xb5   : > { %p1048_p7 = scmp.ne.s32.totalorder %s1513_s4, %s1047_s18  ;;  %p1629_p9 = scmp.ne.s32.totalorder %s1627_s2, 0 }
  0xb6   : > { %v359_v24 = vmul.f32 %v357_v20, %v355_v21  ;;  %v360_v25 = vmul.f32 %v358_v22, %v356_v23  ;;  %s1189_s14 = smov [#allocation10]  }
  0xb7   : > { %s1511_s22 = scalar_lea.hbm %s1628_s15, %s741_s8  ;;  %p1049_p13 = pnand %p1048_p7, %p1629_p9 }
  0xb8   : > { %v361_v26 = vpack.c.bf16 %v360_v25, %v359_v24  ;;  %s1051_s6 = sshll.u32 %s1189_s14, 4  ;;  %s1052_s6 = int_to_ptr.vmem [resolvable:$false] %s1051_s6 }
  0xb9   : > { %p1050_p11 = pneg %p1049_p13  ;;  %s1053_s24 = scalar_lea.vmem %s1052_s6, 512 }
  0xba   : > { %755 = vmatmul.mubr.msk.bf16.vlgmr.msra.gmra.mrb[0].mxu0 %vm370_vm1, %v361_v26  ;;  %761 = vmatmul.mubr.msk.bf16.vlgmr.msra.gmra.mrb[0].mxu1 %vm370_vm1, %v361_v26  ;;  %p1054_p0 = scmp.lt.s32.totalorder %s1513_s4, %s1052_s6  ;;  %p1055_p5 = scmp.lt.s32.totalorder %s1053_s24, %s1047_s18 }
  0xbb   : > { %766 = vmatprep.mubr.msk.bf16.mxu0 %vm1188_vm0, %v1187_v0  ;;  %772 = vmatprep.mubr.msk.bf16.mxu1 %vm1188_vm0, %v1187_v0 }
  0xbc   : > { %p1056_p8 = por %p1055_p5, %p1054_p0 }
  0xbe   : > { %p1057_p12 = pnand %p1056_p8, %p1050_p11 }
 0x18d   : > { %v408_v27 = vpop.f32.mrb[0].mxu0  ;;  %v457_v28 = vpop.f32.mrb[0].mxu1 }
 0x18e   : > { %v756_v29 = vpop.f32.mrb[1].mxu0  ;;  %v762_v30 = vpop.f32.mrb[1].mxu1 }
 0x18f   : > { %v411_v31 = vpop.f32.mrb[2].mxu0  ;;  %v460_v32 = vpop.f32.mrb[2].mxu1 }
 0x190   : > { %v466_v33 = vpack.c.bf16 %v411_v31, %v408_v27  ;;  %v518_v34 = vpack.c.bf16 %v460_v32, %v457_v28  ;;  %v757_v35 = vpop.f32.mrb[3].mxu0  ;;  %v763_v36 = vpop.f32.mrb[3].mxu1 }
 0x192   : > { %765 = vmatpush3.bf16.msra.mxu0 %v466_v33  ;;  %771 = vmatpush3.bf16.msra.mxu1 %v518_v34 }
 0x195   : > { %767 = vmatmul.mubr.msk.bf16.vlgmr.msra.gmra.mrb[4].mxu0 %vm370_vm1, %v923_v37  ;;  %773 = vmatmul.mubr.msk.bf16.vlgmr.msra.gmra.mrb[4].mxu1 %vm370_vm1, %v924_v38 }
 0x268   : > { %v509_v39 = vpop.f32.mrb[4].mxu0  ;;  %v561_v40 = vpop.f32.mrb[4].mxu1 }
 0x269   : > { %v568_v41 = vsub.f32 %v509_v39, %v561_v40  ;;  %v768_v42 = vpop.f32.mrb[5].mxu0  ;;  %v774_v43 = vpop.f32.mrb[5].mxu1 }
 0x26a   : > { %v512_v44 = vpop.f32.mrb[6].mxu0  ;;  %v564_v45 = vpop.f32.mrb[6].mxu1 }
 0x26b   : > { %v570_v46 = vsub.f32 0.0, %v568_v41  ;;  %v569_v47 = vsub.f32 %v512_v44, %v564_v45  ;;  %v769_v48 = vpop.f32.mrb[7].mxu0  ;;  %v775_v49 = vpop.f32.mrb[7].mxu1 }
 0x26d   : > { %v572_v50 = vmul.f32 1.442695, %v570_v46  ;;  %v571_v51 = vsub.f32 0.0, %v569_v47 }
 0x26f   : > { %925 = vpow2.f32 %v572_v50  ;;  %v574_v52 = vmul.f32 1.442695, %v571_v51 }
 0x271   : > { %927 = vpow2.f32 %v574_v52 }
 0x279   : > { %v926_v53 = vpop.eup %925 }
 0x27a   : > { %v576_v54 = vadd.f32 1.0, %v926_v53 }
 0x27b   : > { %v928_v55 = vpop.eup %927 }
 0x27c   : > { %929 = vrcp.f32 %v576_v54  ;;  %v577_v56 = vadd.f32 1.0, %v928_v55 }
 0x27e   : > { %931 = vrcp.f32 %v577_v56 }
 0x286   : > { %v930_v57 = vpop.eup %929 }
 0x287   : > { %580 = vst.msk [vmem:[%s327_s9] sm:$0xff] %vm370_vm1, %v930_v57 }
 0x288   : > { %v932_v58 = vpop.eup %931 }
 0x289   : > { %581 = vst.msk [vmem:[%s327_s9 + $0x8] sm:$0xff] %vm370_vm1, %v932_v58 }
 0x28a   : > { %1060 = shalt.err (!%p1057_p12)
}
 0x28b   : > { %s1061_s20 = scalar_lea.hbm %s1511_s22, 256  ;;  %s1065_s28 = scalar_lea.hbm %s1628_s15, 1536 }
 0x28c   : > { %p1062_p2 = scmp.ne.s32.totalorder %s1511_s22, %s1061_s20  ;;  %p1066_p1 = scmp.lt.u32.totalorder %s1511_s22, %s1628_s15 }
 0x28d   : > { %p1067_p4 = scmp.lt.u32.totalorder %s1065_s28, %s1061_s20  ;;  %p1069_p7 = scmp.lt.u32.totalorder %s1061_s20, %s1511_s22 }
 0x28e   : > { %p1063_p6 = pnand %p1062_p2, %p1629_p9 }
 0x28f   : > { %p1068_p3 = por %p1067_p4, %p1066_p1 }
 0x290   : > { %p1064_p10 = pneg %p1063_p6 }
 0x291   : > { %p1070_p13 = por %p1069_p7, %p1068_p3 }
 0x293   : > { %p1071_p11 = pnand %p1070_p13, %p1064_p10 }
 0x295   : > { %1074 = shalt.err (!%p1071_p11)
}
 0x296   : > { %s1190_s9 = smov 128   ;;  %s1191_s12 = smov 8  }
 0x297   : > { %794 = dma.vmem_to_hbm [thread:$0]  (%p1629_p9), %s1513_s4, 256, %s1511_s22, %s1517_s27, %s1190_s9, %s1190_s9, %s1191_s12  }
 0x298 PF: > { %s1630_s10 = sld [smem:[#allocation15_spill]]  ;;  %s1631_s18 = sld [smem:[#allocation19_spill]] }
 0x299   : > { %p821_p0 = scmp.ge.s32.totalorder %s1177_s7, 2 }
 0x29e   : > { %s613_s14 = sand.u32 1, %s1630_s10   ;;  %p1632_p5 = scmp.ne.s32.totalorder %s1631_s18, 0 }
 0x29f   : > { %s614_s6 = scalar_lea.sflag [#allocation4], %s613_s14 }
 0x2a0   : > { %p811_p8 = pnand %p821_p0, %p1632_p5 }
 0x2a2   : > { %1132 = dma.done.wait (!%p811_p8), %s614_s6, 256  }
 0x2a3   : > { %1134 = vsyncadd (!%p811_p8), %s614_s6, 4294967040  ;;  %s24_s7 = sadd.s32 1, %s1177_s7   ;;  %s1633_s21 = sld [smem:[#allocation16_spill]] }
 0x2a4   : > { %p21_p12 = scmp.ge.s32.totalorder %s24_s7, 8   ;;  %s1634_s22 = smov %s1145_s23 }
 0x2a5   : > { %s1635_s23 = smov %s1418_s17  ;;  %s1636_s24 = smov %s1153_s25 }
 0x2a6   : > { %s1637_s25 = smov %s1157_s26  ;;  %s1638_s26 = smov %s1413_s19 }
 0x2a7   : > { %s1639_s27 = smov %s1169_s29  ;;  %s1640_s28 = smov %s1173_s30 }
 0x2a8   : > { %s1641_s29 = smov %s1644_s1  ;;  %s1642_s30 = smov %s1648_s16 }
 0x2a9   :  { %23 = sbr.rel (!%p21_p12) target bundleno = 16 (0x10), region = 103 }
 0x2b0   :  { %619 = vsyncpa [#allocation3], 1 }
 0x2b1   :  { %621 = vsyncpa [#allocation3 + $0x1], 1 }
 0x2b2   :  { %622 = vsyncpa [#allocation6], 1 }
 0x2b3   :  { %623 = vsyncpa [#allocation9], 1 }
 0x2b4   :  { %624 = vsyncpa [#allocation4], 1 }
 0x2b5   :  { %626 = vsyncpa [#allocation4 + $0x1], 1 }

// kernel: tpu_custom_call.1
= control target key start
LH: loop header
LB: loop body
LE: loop exit
PB: predicated region body
PF: predicated region fallthrough
CT: control target
= control target key end

     0   :  { %s1578_s0 = inlined_call_operand.hbm [shape: f32[2,3,16,16], index: 0, kind: input, shape index: {}]   ;;  %s1579_s1 = inlined_call_operand.hbm [shape: f32[16,16], index: 1, kind: input, shape index: {}]   ;;  %s1580_s2 = inlined_call_operand.hbm [shape: bf16[16,16], index: 2, kind: input, shape index: {}]   ;;  %s1581_s3 = inlined_call_operand.vmem [shape: bf16[16,16], index: 3, kind: input, shape index: {}]   ;;  %s1582_s4 = inlined_call_operand.hbm [shape: bf16[16,16], index: 4, kind: input, shape index: {}]   ;;  %s1583_s5 = inlined_call_operand.vmem [shape: bf16[16,16], index: 5, kind: input, shape index: {}]   ;;  %s1584_s6 = inlined_call_operand.hbm [shape: f32[2,3,16,16], index: 6, kind: output, shape index: {}]  }
   0x1   :  { %1598 = sst [smem:[#allocation20_spill]] %s1579_s1 }
   0x2   :  { %1599 = sst [smem:[#allocation21_spill]] %s1580_s2 }
   0x3   :  { %1600 = sst [smem:[#allocation22_spill]] %s1582_s4 }
   0x4   :  { %1601 = sst [smem:[#allocation23_spill]] %s1584_s6 }
   0x5   :  { %11 = vsyncpa [#allocation3], 0 }
   0x6   :  { %13 = vsyncpa [#allocation3 + $0x1], 0 }
   0x7   :  { %14 = vsyncpa [#allocation6], 0 }
   0x8   :  { %15 = vsyncpa [#allocation9], 0 }
   0x9   :  { %16 = vsyncpa [#allocation4], 0 }
   0xa   :  { %18 = vsyncpa [#allocation4 + $0x1], 0  ;;  %s1227_s21 = smov 0   ;;  %s1229_s22 = smov 0  }
   0xb   :  { %s1231_s23 = smov 0   ;;  %s1233_s24 = smov 0  }
   0xc   :  { %s1235_s25 = smov 0   ;;  %s1237_s26 = smov 0  }
   0xd   :  { %s1239_s27 = smov 0   ;;  %s1241_s28 = smov 0  }
   0xe   :  { %s1243_s29 = smov 0   ;;  %s1245_s30 = smov 0  }
   0xf   :  { %s1247_s7 = smov 0  }
  0x10 LB: > { %1602 = sst [smem:[#allocation15_spill]] %s1137_s21  ;;  %s714_s8 = sadd.s32 4294967295, %s1177_s7   ;;  %s1177_s7 = sphi %s1247_s7, %s24_s7   ;;  %s1173_s30 = sphi %s1245_s30, %s1642_s30   ;;  %s1169_s29 = sphi %s1243_s29, %s1641_s29   ;;  %s1165_s28 = sphi %s1241_s28, %s1640_s28   ;;  %s1161_s27 = sphi %s1239_s27, %s1639_s27   ;;  %s1157_s26 = sphi %s1237_s26, %s1638_s26   ;;  %s1153_s25 = sphi %s1235_s25, %s1637_s25   ;;  %s1149_s24 = sphi %s1233_s24, %s1636_s24   ;;  %s1145_s23 = sphi %s1231_s23, %s1635_s23   ;;  %s1141_s22 = sphi %s1229_s22, %s1634_s22   ;;  %s1137_s21 = sphi %s1227_s21, %s1633_s21  }
  0x11   : > { %1603 = sst [smem:[#allocation16_spill]] %s1141_s22  ;;  %s715_s9 = sadd.s32 4294967294, %s1177_s7  }
  0x12   : > { %1604 = sst [smem:[#allocation17_spill]] %s1165_s28  ;;  %p56_p0 = scmp.ne.s32.totalorder %s1153_s25, %s1149_s24 }
  0x13   : > { %p1283_p1 = scmp.eq.s32.totalorder %s714_s8, 0  ;;  %p186_p2 = scmp.ne.s32.totalorder %s1145_s23, %s1141_s22 }
  0x14   : > { %p187_p4 = scmp.eq.s32.totalorder %s714_s8, 5  ;;  %p192_p5 = scmp.ne.s32.totalorder %s1141_s22, %s1137_s21 }
  0x15   : > { %s1605_s10 = scalar_select %p1283_p1, 1, 0 }
  0x16   : > { %p1292_p3 = por %p1283_p1, %p56_p0  ;;  %p193_p6 = scmp.eq.s32.totalorder %s715_s9, 5 }
  0x17   : > { %p1298_p7 = por %p187_p4, %p186_p2  ;;  %p716_p8 = scmp.ge.s32.totalorder %s1177_s7, 1 }
  0x18   : > { %s1606_s12 = scalar_select %p1292_p3, 1, 0 }
  0x19   : > { %s1607_s13 = scalar_select %p1298_p7, 1, 0 }
  0x1a   : > { %p1303_p9 = por %p193_p6, %p192_p5  ;;  %p200_p10 = scmp.lt.s32.totalorder %s1177_s7, 7 }
  0x1b   : > { %1608 = sst [smem:[#allocation18_spill]] %s1607_s13  ;;  %s1179_s16 = smov [#allocation5]  }
  0x1c   : > { %s1609_s14 = scalar_select %p1303_p9, 1, 0 }
  0x1d   : > { %p1308_p11 = pnand %p716_p8, %p200_p10  ;;  %s212_s17 = sshll.u32 %s1179_s16, 4  ;;  %s213_s17 = int_to_ptr.vmem [resolvable:$true] %s212_s17 }
  0x1e   : > { %1610 = sst [smem:[#allocation19_spill]] %s1609_s14  ;;  %s1180_s19 = smov [#allocation7]  }
  0x1f   : > { %s1611_s15 = scalar_select %p1308_p11, 1, 0 }
  0x20   : > { %p796_p12 = pneg %p1308_p11  ;;  %s225_s20 = sshll.u32 %s1180_s19, 4  ;;  %s1320_s20 = int_to_ptr.vmem [resolvable:$true] %s225_s20 }
  0x21   : > { %s1613_s1 = sld [smem:[#allocation20_spill]] }
  0x22   : > { %p1316_p13 = pnand %p796_p12, %p1283_p1 }
  0x24   : > { %p1330_p2 = pneg %p1316_p13 }
  0x27   : > { %s933_s9 = scalar_lea.hbm %s1613_s1, 256 }
  0x28   : > { %p934_p0 = scmp.ne.s32.totalorder %s1613_s1, %s933_s9  ;;  %p940_p6 = scmp.lt.u32.totalorder %s933_s9, %s1613_s1 }
  0x2a   : > { %p936_p4 = pnand %p1330_p2, %p934_p0 }
  0x2c   : > { %p937_p5 = pneg %p936_p4 }
  0x2e   : > { %p942_p8 = pnand %p940_p6, %p937_p5 }
  0x30   : > { %945 = shalt.err (!%p942_p8)
}
  0x31   : > { %s946_s24 = scalar_lea.vmem %s213_s17, 256  ;;  %p954_p7 = scmp.lt.s32.totalorder %s213_s17, %s213_s17 }
  0x32   : > { %p947_p10 = scmp.ne.s32.totalorder %s213_s17, %s946_s24  ;;  %p955_p1 = scmp.lt.s32.totalorder %s946_s24, %s946_s24 }
  0x34   : > { %p949_p12 = pnand %p947_p10, %p1330_p2  ;;  %p956_p3 = por %p955_p1, %p954_p7 }
  0x36   : > { %p950_p9 = pneg %p949_p12 }
  0x38   : > { %p957_p11 = pnand %p956_p3, %p950_p9 }
  0x3a   : > { %960 = shalt.err (!%p957_p11)
}
  0x3b   : > { %s1596_s11 = smov 128   ;;  %s1597_s14 = smov 8  }
  0x3c   : > { %799 = dma.hbm_to_vmem [thread:$0]  (!%p1316_p13), %s1613_s1, 256, %s213_s17, [#allocation6], %s1596_s11, %s1596_s11, %s1597_s14  }
  0x3d   : > { %s1615_s2 = sld [smem:[#allocation21_spill]] }
  0x43   : > { %s961_s6 = scalar_lea.hbm %s1615_s2, 128 }
  0x44   : > { %p962_p1 = scmp.ne.s32.totalorder %s1615_s2, %s961_s6  ;;  %p968_p9 = scmp.lt.u32.totalorder %s961_s6, %s1615_s2 }
  0x46   : > { %p964_p3 = pnand %p962_p1, %p1330_p2 }
  0x48   : > { %p965_p7 = pneg %p964_p3 }
  0x4a   : > { %p970_p11 = pnand %p968_p9, %p965_p7 }
  0x4c   : > { %973 = shalt.err (!%p970_p11)
}
  0x4d   : > { %s974_s17 = scalar_lea.vmem %s1320_s20, 128  ;;  %p982_p6 = scmp.lt.s32.totalorder %s1320_s20, %s1320_s20 }
  0x4e   : > { %p975_p0 = scmp.ne.s32.totalorder %s1320_s20, %s974_s17  ;;  %p983_p8 = scmp.lt.s32.totalorder %s974_s17, %s974_s17 }
  0x50   : > { %p977_p4 = pnand %p975_p0, %p1330_p2  ;;  %p984_p10 = por %p983_p8, %p982_p6 }
  0x52   : > { %p978_p5 = pneg %p977_p4 }
  0x54   : > { %p985_p12 = pnand %p984_p10, %p978_p5 }
  0x56   : > { %988 = shalt.err (!%p985_p12)
}
  0x57   : > { %s1183_s13 = smov 64   ;;  %s1184_s6 = smov 4  }
  0x58   : > { %802 = dma.hbm_to_vmem [thread:$0]  (!%p1316_p13), %s1615_s2, 128, %s1320_s20, [#allocation6], %s1183_s13, %s1183_s13, %s1184_s6  }
  0x59   : > { %s1185_s21 = smov [#allocation8]   ;;  %s1616_s4 = sld [smem:[#allocation22_spill]] }
  0x5a   : > { %s241_s8 = sshll.u32 %s1185_s21, 4  ;;  %s242_s8 = int_to_ptr.vmem [resolvable:$true] %s241_s8 }
  0x5f   : > { %s989_s24 = scalar_lea.hbm %s1616_s4, 128 }
  0x60   : > { %p990_p1 = scmp.ne.s32.totalorder %s1616_s4, %s989_s24  ;;  %p996_p9 = scmp.lt.u32.totalorder %s989_s24, %s1616_s4 }
  0x62   : > { %p992_p3 = pnand %p990_p1, %p1330_p2 }
  0x64   : > { %p993_p7 = pneg %p992_p3 }
  0x66   : > { %p998_p11 = pnand %p996_p9, %p993_p7 }
  0x68   : > { %1001 = shalt.err (!%p998_p11)
}
  0x69   : > { %s1002_s20 = scalar_lea.vmem %s242_s8, 128  ;;  %p1010_p6 = scmp.lt.s32.totalorder %s242_s8, %s242_s8 }
  0x6a   : > { %p1003_p0 = scmp.ne.s32.totalorder %s242_s8, %s1002_s20  ;;  %p1011_p8 = scmp.lt.s32.totalorder %s1002_s20, %s1002_s20 }
  0x6c   : > { %p1005_p4 = pnand %p1003_p0, %p1330_p2  ;;  %p1012_p10 = por %p1011_p8, %p1010_p6 }
  0x6e   : > { %p1006_p5 = pneg %p1005_p4 }
  0x70   : > { %p1013_p12 = pnand %p1012_p10, %p1006_p5 }
  0x72   : > { %1016 = shalt.err (!%p1013_p12)
}
  0x73   : > { %805 = dma.hbm_to_vmem [thread:$0]  (!%p1316_p13), %s1616_s4, 128, %s242_s8, [#allocation9], %s1183_s13, %s1183_s13, %s1184_s6  }
  0x74   : > { %s33_s1 = sadd.s32 1, %s1169_s29  ;;  %s36_s16 = sadd.s32 1, %s1173_s30 }
  0x75   : > { %p34_p2 = scmp.ge.s32.totalorder %s33_s1, 3  ;;  %s43_s18 = sadd.s32 1, %s1157_s26 }
  0x76   : > { %p50_p1 = scmp.ne.s32.totalorder %s1157_s26, %s1153_s25  ;;  %p51_p3 = scmp.eq.s32.totalorder %s1177_s7, 0 }
  0x77   : > { %s1644_s1 = smov (%p34_p2, %s33_s1), 0  ;;  %s1646_s16 = smov (!%p34_p2, %s36_s16), %s1173_s30 }
  0x78   : > { %s172_s14 = ssub.s32 %s1169_s29, %s1644_s1  ;;  %p38_p7 = scmp.ge.s32.totalorder %s1646_s16, 2 }
  0x79   : > { %p817_p9 = scmp.lt.s32.totalorder %s1177_s7, 6  ;;  %p1402_p13 = por %p51_p3, %p50_p1 }
  0x7a   : > { %s258_s6 = sand.u32 1, %s1157_s26   ;;  %s1648_s16 = smov (%p38_p7, %s1646_s16), 0 }
  0x7b   : > { %s776_s28 = smul.u32 48, %s258_s6  ;;  %s40_s21 = ssub.s32 %s1173_s30, %s1648_s16 }
  0x7c   : > { %s777_s8 = smul.u32 768, %s1173_s30  ;;  %p41_p11 = scmp.eq.s32.totalorder %s40_s21, 0 }
  0x7d   : > { %s173_s9 = sor.u32 %s172_s14, %s40_s21  ;;  %s1618_s24 = sadd.s32 1, %s1145_s23 }
  0x7e   : > { %p174_p0 = scmp.eq.s32.totalorder %s173_s9, 0  ;;  %s1423_s22 = scalar_lea.hbm %s1578_s0, %s777_s8 }
  0x7f   : > { %s1413_s19 = scalar_select %p41_p11, %s1157_s26, %s43_s18  }
  0x80   : > { %s1418_s17 = scalar_select %p174_p0, %s1145_s23, %s1618_s24  }
  0x81   : > { %s262_s2 = scalar_lea.vmem [#allocation2], %s776_s28  ;;  %p1431_p4 = pnand %p817_p9, %p1402_p13 }
  0x82   : > { %s269_s4 = sshll.u32 %s262_s2, 4  ;;  %s1435_s14 = scalar_lea.sflag [#allocation3], %s258_s6  ;;  %s1425_s4 = int_to_ptr.vmem [resolvable:$true] %s269_s4 }
  0x83   : > { %s1017_s21 = scalar_lea.hbm %s1423_s22, 768  ;;  %p1019_p6 = pneg %p1431_p4 }
  0x84   : > { %p1018_p5 = scmp.ne.s32.totalorder %s1423_s22, %s1017_s21  ;;  %s1022_s13 = scalar_lea.hbm %s1578_s0, 1536 }
  0x85   : > { %p1023_p12 = scmp.lt.u32.totalorder %s1423_s22, %s1578_s0  ;;  %p1024_p2 = scmp.lt.u32.totalorder %s1022_s13, %s1017_s21 }
  0x86   : > { %p1020_p8 = pnand %p1019_p6, %p1018_p5  ;;  %p1026_p3 = scmp.lt.u32.totalorder %s1017_s21, %s1423_s22 }
  0x87   : > { %p1025_p1 = por %p1024_p2, %p1023_p12 }
  0x88   : > { %p1021_p10 = pneg %p1020_p8 }
  0x89   : > { %p1027_p7 = por %p1026_p3, %p1025_p1 }
  0x8b   : > { %p1028_p9 = pnand %p1027_p7, %p1021_p10 }
  0x8d   : > { %1031 = shalt.err (!%p1028_p9)
}
  0x8e   : > { %s1032_s6 = scalar_lea.vmem %s1425_s4, 768  ;;  %s1186_s24 = smov [#allocation2]  }
  0x8f   : > { %p1033_p13 = scmp.ne.s32.totalorder %s1425_s4, %s1032_s6  ;;  %s1037_s20 = sshll.u32 %s1186_s24, 4  ;;  %s1038_s20 = int_to_ptr.vmem [resolvable:$false] %s1037_s20 }
  0x90   : > { %s1039_s11 = scalar_lea.vmem %s1038_s20, 1536  ;;  %p1040_p5 = scmp.lt.s32.totalorder %s1425_s4, %s1038_s20 }
  0x91   : > { %p1035_p11 = pnand %p1033_p13, %p1019_p6  ;;  %p1041_p8 = scmp.lt.s32.totalorder %s1039_s11, %s1032_s6 }
  0x93   : > { %p1036_p0 = pneg %p1035_p11  ;;  %p1042_p12 = por %p1041_p8, %p1040_p5 }
  0x95   : > { %p1043_p2 = pnand %p1042_p12, %p1036_p0 }
  0x97   : > { %1046 = shalt.err (!%p1043_p2)
}
  0x98   : > { %s1620_s21 = smov 8   ;;  %s1621_s2 = smov 128  }
  0x99   : > { %809 = dma.hbm_to_vmem [thread:$0]  (!%p1431_p4), %s1423_s22, 768, %s1425_s4, %s1435_s14, %s1621_s2, %s1621_s2, %s1620_s21  }
  0x9a   : > { %p1622_p6 = scmp.ne.s32.totalorder %s1611_s15, 0 }
  0x9b   : > { %s283_s28 = sand.u32 (!%p1622_p6), 1, %s1153_s25   ;;  %p1623_p10 = scmp.ne.s32.totalorder (!%p1622_p6), %s1606_s12, 0 }
  0x9c   : > { %281 = sbr.rel (%p1622_p6) target bundleno = 664 (0x298), region = 44  ;;  %s284_s8 = scalar_lea.sflag (!%p1622_p6), [#allocation3], %s283_s28 }
  0x9d   : > { %s778_s13 = smul.u32 (!%p1622_p6), 48, %s283_s28 }
  0x9f   : > { %s1469_s9 = scalar_lea.vmem (!%p1622_p6), [#allocation2], %s778_s13 }
  0xa3   : > { %1120 = dma.done.wait (%p1623_p10), %s284_s8, 768  }
  0xa4   : > { %1122 = vsyncadd (%p1623_p10), %s284_s8, 4294966528  ;;  %p1624_p1 = scmp.ne.s32.totalorder %s1605_s10, 0 }
  0xa6   : > { %1124 = dma.done.wait (%p1624_p1), [#allocation6], 384  }
  0xa7   : > { %1126 = vsyncadd (%p1624_p1), [#allocation6], 4294966912 }
  0xa8   : > { %1128 = dma.done.wait (%p1624_p1), [#allocation9], 128  }
  0xa9   : > { %1130 = vsyncadd (%p1624_p1), [#allocation9], 4294967168  ;;  %p329_p4 = scmp.eq.s32.totalorder %s1161_s27, 0  ;;  %p336_p3 = scmp.eq.s32.totalorder %s1161_s27, 1  ;;  %v1187_v0 = vmov 0.0   ;;  %vm1188_vm0 = vmmov 0  }
  0xaa   : > { %752 = vmatprep.subr.bf16.mxu0 %v1187_v0  ;;  %758 = vmatprep.subr.bf16.mxu1 %v1187_v0  ;;  %v921_v1 = vld [vmem:[#allocation7] sm:$0xff]   ;;  %v922_v4 = vld [vmem:[%s1581_s3] sm:$0xff]   ;;  %v332_v7 = vld [vmem:[%s1469_s9 + $0x8] sm:$0xff]  ;;  %vm370_vm1 = vcmask 130048   ;;  %s1625_s6 = sld [smem:[#allocation16_spill]]  ;;  %s1626_s24 = sld [smem:[#allocation17_spill]] }
  0xab   : > { %754 = vmatprep.mubr.msk.bf16.mxu0 %vm1188_vm0, %v1187_v0  ;;  %760 = vmatprep.mubr.msk.bf16.mxu1 %vm1188_vm0, %v1187_v0  ;;  %s330_s4 = scalar_select %p329_p4, 0.56282854, 0.5844758  ;;  %v331_v6 = vld [vmem:[%s1469_s9] sm:$0xff]  ;;  %v727_v8 = vld [vmem:[%s1469_s9 + $0x10] sm:$0xff] }
  0xac   : > { %s337_s12 = scalar_select %p336_p3, 0.0, -0.19482528  ;;  %753 = vmatpush3.bf16.msra.mxu0 %v921_v1  ;;  %759 = vmatpush3.bf16.msra.mxu1 %v922_v4  ;;  %v728_v11 = vld [vmem:[%s1469_s9 + $0x18] sm:$0xff]  ;;  %v729_v13 = vld [vmem:[%s1469_s9 + $0x20] sm:$0xff]  ;;  %v730_v14 = vld [vmem:[%s1469_s9 + $0x28] sm:$0xff] }
  0xad   : > { %s347_s10 = scalar_select %p336_p3, -0.10823626, 0.06494176  ;;  %v333_v2 = vstv %s330_s4  ;;  %764 = vmatprep.subr.bf16.mxu0 %v1187_v0  ;;  %770 = vmatprep.subr.bf16.mxu1 %v1187_v0  ;;  %v357_v20 = vld [vmem:[#allocation5] sm:$0xff]  ;;  %v358_v22 = vld [vmem:[#allocation5 + $0x8] sm:$0xff] }
  0xae   : > { %s1650_s12 = smov (%p329_p4, %s337_s12), 0.19482528  ;;  %v334_v9 = vmul.f32 %v333_v2, %v331_v6  ;;  %v335_v10 = vmul.f32 %v333_v2, %v332_v7  ;;  %v923_v37 = vld [vmem:[#allocation8] sm:$0xff]   ;;  %v924_v38 = vld [vmem:[%s1583_s5] sm:$0xff]   ;;  %s1627_s2 = sld [smem:[#allocation18_spill]] }
  0xaf   : > { %s1652_s10 = smov (%p329_p4, %s347_s10), 0.043294504  ;;  %v342_v3 = vstv %s1650_s12  ;;  %s740_s28 = sshll.u32 %s1161_s27, 1 }
  0xb0   : > { %v352_v5 = vstv %s1652_s10  ;;  %v343_v12 = vmul.f32 %v727_v8, %v342_v3  ;;  %v344_v15 = vmul.f32 %v728_v11, %v342_v3  ;;  %s325_s20 = sand.u32 1, %s1625_s6   ;;  %s779_s11 = smul.u32 6, %s1626_s24 }
  0xb1   : > { %v353_v16 = vmul.f32 %v729_v13, %v352_v5  ;;  %v354_v17 = vmul.f32 %v730_v14, %v352_v5  ;;  %s726_s21 = sshll.u32 %s325_s20, 4  ;;  %s1628_s15 = sld [smem:[#allocation23_spill]] }
  0xb2   : > { %v345_v18 = vadd.f32 %v343_v12, %v334_v9  ;;  %v346_v19 = vadd.f32 %v344_v15, %v335_v10  ;;  %s595_s13 = sadd.s32 %s779_s11, %s740_s28  ;;  %s327_s9 = scalar_lea.vmem [#allocation10], %s726_s21 }
  0xb3   : > { %s741_s8 = sshll.u32 %s595_s13, 7  ;;  %s598_s4 = sshll.u32 %s327_s9, 4  ;;  %s1513_s4 = int_to_ptr.vmem [resolvable:$true] %s598_s4 }
  0xb4   : > { %v355_v21 = vadd.f32 %v353_v16, %v345_v18  ;;  %v356_v23 = vadd.f32 %v354_v17, %v346_v19  ;;  %s1517_s27 = scalar_lea.sflag [#allocation4], %s325_s20  ;;  %s1047_s18 = scalar_lea.vmem %s1513_s4, 256 }
  0xb5   : > { %p1048_p7 = scmp.ne.s32.totalorder %s1513_s4, %s1047_s18  ;;  %p1629_p9 = scmp.ne.s32.totalorder %s1627_s2, 0 }
  0xb6   : > { %v359_v24 = vmul.f32 %v357_v20, %v355_v21  ;;  %v360_v25 = vmul.f32 %v358_v22, %v356_v23  ;;  %s1189_s14 = smov [#allocation10]  }
  0xb7   : > { %s1511_s22 = scalar_lea.hbm %s1628_s15, %s741_s8  ;;  %p1049_p13 = pnand %p1048_p7, %p1629_p9 }
  0xb8   : > { %v361_v26 = vpack.c.bf16 %v360_v25, %v359_v24  ;;  %s1051_s6 = sshll.u32 %s1189_s14, 4  ;;  %s1052_s6 = int_to_ptr.vmem [resolvable:$false] %s1051_s6 }
  0xb9   : > { %p1050_p11 = pneg %p1049_p13  ;;  %s1053_s24 = scalar_lea.vmem %s1052_s6, 512 }
  0xba   : > { %755 = vmatmul.mubr.msk.bf16.vlgmr.msra.gmra.mrb[0].mxu0 %vm370_vm1, %v361_v26  ;;  %761 = vmatmul.mubr.msk.bf16.vlgmr.msra.gmra.mrb[0].mxu1 %vm370_vm1, %v361_v26  ;;  %p1054_p0 = scmp.lt.s32.totalorder %s1513_s4, %s1052_s6  ;;  %p1055_p5 = scmp.lt.s32.totalorder %s1053_s24, %s1047_s18 }
  0xbb   : > { %766 = vmatprep.mubr.msk.bf16.mxu0 %vm1188_vm0, %v1187_v0  ;;  %772 = vmatprep.mubr.msk.bf16.mxu1 %vm1188_vm0, %v1187_v0 }
  0xbc   : > { %p1056_p8 = por %p1055_p5, %p1054_p0 }
  0xbe   : > { %p1057_p12 = pnand %p1056_p8, %p1050_p11 }
 0x18d   : > { %v408_v27 = vpop.f32.mrb[0].mxu0  ;;  %v457_v28 = vpop.f32.mrb[0].mxu1 }
 0x18e   : > { %v756_v29 = vpop.f32.mrb[1].mxu0  ;;  %v762_v30 = vpop.f32.mrb[1].mxu1 }
 0x18f   : > { %v411_v31 = vpop.f32.mrb[2].mxu0  ;;  %v460_v32 = vpop.f32.mrb[2].mxu1 }
 0x190   : > { %v466_v33 = vpack.c.bf16 %v411_v31, %v408_v27  ;;  %v518_v34 = vpack.c.bf16 %v460_v32, %v457_v28  ;;  %v757_v35 = vpop.f32.mrb[3].mxu0  ;;  %v763_v36 = vpop.f32.mrb[3].mxu1 }
 0x192   : > { %765 = vmatpush3.bf16.msra.mxu0 %v466_v33  ;;  %771 = vmatpush3.bf16.msra.mxu1 %v518_v34 }
 0x195   : > { %767 = vmatmul.mubr.msk.bf16.vlgmr.msra.gmra.mrb[4].mxu0 %vm370_vm1, %v923_v37  ;;  %773 = vmatmul.mubr.msk.bf16.vlgmr.msra.gmra.mrb[4].mxu1 %vm370_vm1, %v924_v38 }
 0x268   : > { %v509_v39 = vpop.f32.mrb[4].mxu0  ;;  %v561_v40 = vpop.f32.mrb[4].mxu1 }
 0x269   : > { %v568_v41 = vsub.f32 %v509_v39, %v561_v40  ;;  %v768_v42 = vpop.f32.mrb[5].mxu0  ;;  %v774_v43 = vpop.f32.mrb[5].mxu1 }
 0x26a   : > { %v512_v44 = vpop.f32.mrb[6].mxu0  ;;  %v564_v45 = vpop.f32.mrb[6].mxu1 }
 0x26b   : > { %v570_v46 = vsub.f32 0.0, %v568_v41  ;;  %v569_v47 = vsub.f32 %v512_v44, %v564_v45  ;;  %v769_v48 = vpop.f32.mrb[7].mxu0  ;;  %v775_v49 = vpop.f32.mrb[7].mxu1 }
 0x26d   : > { %v572_v50 = vmul.f32 1.442695, %v570_v46  ;;  %v571_v51 = vsub.f32 0.0, %v569_v47 }
 0x26f   : > { %925 = vpow2.f32 %v572_v50  ;;  %v574_v52 = vmul.f32 1.442695, %v571_v51 }
 0x271   : > { %927 = vpow2.f32 %v574_v52 }
 0x279   : > { %v926_v53 = vpop.eup %925 }
 0x27a   : > { %v576_v54 = vadd.f32 1.0, %v926_v53 }
 0x27b   : > { %v928_v55 = vpop.eup %927 }
 0x27c   : > { %929 = vrcp.f32 %v576_v54  ;;  %v577_v56 = vadd.f32 1.0, %v928_v55 }
 0x27e   : > { %931 = vrcp.f32 %v577_v56 }
 0x286   : > { %v930_v57 = vpop.eup %929 }
 0x287   : > { %580 = vst.msk [vmem:[%s327_s9] sm:$0xff] %vm370_vm1, %v930_v57 }
 0x288   : > { %v932_v58 = vpop.eup %931 }
 0x289   : > { %581 = vst.msk [vmem:[%s327_s9 + $0x8] sm:$0xff] %vm370_vm1, %v932_v58 }
 0x28a   : > { %1060 = shalt.err (!%p1057_p12)
}
 0x28b   : > { %s1061_s20 = scalar_lea.hbm %s1511_s22, 256  ;;  %s1065_s28 = scalar_lea.hbm %s1628_s15, 1536 }
 0x28c   : > { %p1062_p2 = scmp.ne.s32.totalorder %s1511_s22, %s1061_s20  ;;  %p1066_p1 = scmp.lt.u32.totalorder %s1511_s22, %s1628_s15 }
 0x28d   : > { %p1067_p4 = scmp.lt.u32.totalorder %s1065_s28, %s1061_s20  ;;  %p1069_p7 = scmp.lt.u32.totalorder %s1061_s20, %s1511_s22 }
 0x28e   : > { %p1063_p6 = pnand %p1062_p2, %p1629_p9 }
 0x28f   : > { %p1068_p3 = por %p1067_p4, %p1066_p1 }
 0x290   : > { %p1064_p10 = pneg %p1063_p6 }
 0x291   : > { %p1070_p13 = por %p1069_p7, %p1068_p3 }
 0x293   : > { %p1071_p11 = pnand %p1070_p13, %p1064_p10 }
 0x295   : > { %1074 = shalt.err (!%p1071_p11)
}
 0x296   : > { %s1190_s9 = smov 128   ;;  %s1191_s12 = smov 8  }
 0x297   : > { %794 = dma.vmem_to_hbm [thread:$0]  (%p1629_p9), %s1513_s4, 256, %s1511_s22, %s1517_s27, %s1190_s9, %s1190_s9, %s1191_s12  }
 0x298 PF: > { %s1630_s10 = sld [smem:[#allocation15_spill]]  ;;  %s1631_s18 = sld [smem:[#allocation19_spill]] }
 0x299   : > { %p821_p0 = scmp.ge.s32.totalorder %s1177_s7, 2 }
 0x29e   : > { %s613_s14 = sand.u32 1, %s1630_s10   ;;  %p1632_p5 = scmp.ne.s32.totalorder %s1631_s18, 0 }
 0x29f   : > { %s614_s6 = scalar_lea.sflag [#allocation4], %s613_s14 }
 0x2a0   : > { %p811_p8 = pnand %p821_p0, %p1632_p5 }
 0x2a2   : > { %1132 = dma.done.wait (!%p811_p8), %s614_s6, 256  }
 0x2a3   : > { %1134 = vsyncadd (!%p811_p8), %s614_s6, 4294967040  ;;  %s24_s7 = sadd.s32 1, %s1177_s7   ;;  %s1633_s21 = sld [smem:[#allocation16_spill]] }
 0x2a4   : > { %p21_p12 = scmp.ge.s32.totalorder %s24_s7, 8   ;;  %s1634_s22 = smov %s1145_s23 }
 0x2a5   : > { %s1635_s23 = smov %s1418_s17  ;;  %s1636_s24 = smov %s1153_s25 }
 0x2a6   : > { %s1637_s25 = smov %s1157_s26  ;;  %s1638_s26 = smov %s1413_s19 }
 0x2a7   : > { %s1639_s27 = smov %s1169_s29  ;;  %s1640_s28 = smov %s1173_s30 }
 0x2a8   : > { %s1641_s29 = smov %s1644_s1  ;;  %s1642_s30 = smov %s1648_s16 }
 0x2a9   :  { %23 = sbr.rel (!%p21_p12) target bundleno = 16 (0x10), region = 103 }
 0x2b0   :  { %619 = vsyncpa [#allocation3], 1 }
 0x2b1   :  { %621 = vsyncpa [#allocation3 + $0x1], 1 }
 0x2b2   :  { %622 = vsyncpa [#allocation6], 1 }
 0x2b3   :  { %623 = vsyncpa [#allocation9], 1 }
 0x2b4   :  { %624 = vsyncpa [#allocation4], 1 }
 0x2b5   :  { %626 = vsyncpa [#allocation4 + $0x1], 1 }

</bundles_post_ra>
